<compile_context>
chip_gen: v7x
topology: tpu7x:2x2x1
jax: 0.10.0
libtpu: 0.0.40
codegen_flags: <defaults>
</compile_context>

<pallas_src>
import functools
import math

import jax
import jax.numpy as jnp
from jax.experimental import pallas as pl
from jax.experimental.pallas import tpu as pltpu

LMAX = 2.0


# ----------------------------------------------------------------------------
# Fused kernel: Chebyshev recursion + projection + bias for one feature tile.
#   L_ref: (N, N)              graph operator (the -I of L_tilde is folded into
#                              the recursion; no eye / O(N^2) VPU work)
#   x_ref: (N, TF*Cin)         T_0 columns for this tile (f-major, c-minor)
#   w_ref: (K, TF*Cin, TF*Fp)  block-diagonal expanded weight (identical every
#                              tile -> constant index_map, loaded once, resident)
#   b_ref: (1, TF*Fp)          bias tiled over the local feature index
#   o_ref: (N, TF*Fp)          lane-dense output slab (TF*Fp % 128 == 0)
# ----------------------------------------------------------------------------
def _cheb_gconv_kernel(L_ref, x_ref, w_ref, b_ref, o_ref, *, K, lmax):
    scale = 2.0 / lmax
    md = w_ref.dtype                       # MXU input dtype (f32 exact / bf16 fast)
    L = L_ref[...]                         # resident across grid steps
    t_prev = x_ref[...]                    # T_0 (f32)

    acc = jnp.dot(t_prev.astype(md), w_ref[0], preferred_element_type=jnp.float32)
    if K >= 2:
        # T_1 = L_tilde @ T_0 = (2/lmax) L T_0 - T_0  (no eye materialized)
        t_cur = scale * jnp.dot(L, t_prev.astype(md),
                                preferred_element_type=jnp.float32) - t_prev
        acc = acc + jnp.dot(t_cur.astype(md), w_ref[1],
                            preferred_element_type=jnp.float32)
        for k in range(2, K):
            # T_k = 2 L_tilde T_{k-1} - T_{k-2}
            t_next = ((2.0 * scale)
                      * jnp.dot(L, t_cur.astype(md),
                                preferred_element_type=jnp.float32)
                      - 2.0 * t_cur - t_prev)
            acc = acc + jnp.dot(t_next.astype(md), w_ref[k],
                                preferred_element_type=jnp.float32)
            t_prev, t_cur = t_cur, t_next

    o_ref[...] = (acc + b_ref[...]).astype(o_ref.dtype)


# ----------------------------------------------------------------------------
# Tile planner (feedback items 3, 5, 6, 8):
#   * x tile (N, TF*Cin) must satisfy the (8,128) lane rule: TF*Cin % 128 == 0
#     or TF == F (full-array block).
#   * output tile is made lane-dense by zero-padding Fout -> Fp with
#     TF*Fp % 128 == 0 (sliced off after the call).
#   * prefer >= 2 grid steps (v7x megacore), then the largest TF whose
#     double-buffered working set (incl. the expanded weight) fits the budget.
# ----------------------------------------------------------------------------
def _plan(N, F, Cin, Fout, K,
          weight_cap_bytes=8 * 2**20, vmem_budget_bytes=40 * 2**20):
    def fout_pad(tf):
        step = 128 // math.gcd(tf, 128)
        return ((Fout + step - 1) // step) * step

    best = None
    for tf in range(1, F + 1):
        if F % tf:
            continue
        if tf != F and (tf * Cin) % 128 != 0:
            continue
        fp = fout_pad(tf)
        w_bytes = 2 * 4 * K * (tf * Cin) * (tf * fp)             # double-buffered
        vmem = 2 * 4 * (N * N + N * tf * Cin + tf * fp + N * tf * fp) + w_bytes
        fits = (w_bytes <= weight_cap_bytes) and (vmem <= vmem_budget_bytes)
        multi = (F // tf) >= 2
        score = (fits, multi, tf)
        if best is None or score > best[0]:
            best = (score, tf, fp, vmem)
    _, tf, fp, vmem = best
    return tf, fp, vmem


def dense_cheb_gconv2d(x, L, weight, bias, receptive_field_k, *,
                       lmax=LMAX, mxu_dtype=jnp.float32):
    """Forward pass of DenseChebyshevGConv2d.

    x: (N, F, Cin) f32, L: (N, N) f32, weight: (Cin*K, Fout), bias: (Fout,)|None
    returns: (N, F, Fout) f32.  mxu_dtype=jnp.bfloat16 enables fast MXU inputs
    (f32 accumulation kept).
    """
    K = receptive_field_k
    N, F, Cin = x.shape
    Fout = weight.shape[1]

    TF, Fp, vmem_est = _plan(N, F, Cin, Fout, K)
    n_blocks = F // TF

    # Contiguous view, no transpose: x2[n, f*Cin + c] = x[n, f, c]
    x2 = x.reshape(N, F * Cin)

    # weight[c*K + k, o] -> (K, Cin, Fout), zero-pad Fout -> Fp for lane density.
    w_kco = weight.reshape(Cin, K, Fout).transpose(1, 0, 2)
    if Fp != Fout:
        w_kco = jnp.pad(w_kco, ((0, 0), (0, 0), (0, Fp - Fout)))
    # Block-diagonal expansion over the *local* feature index (identical for every
    # feature tile): w_exp[k, f*Cin + c, g*Fp + o] = (f == g) * weight[c*K + k, o]
    eye_f = jnp.eye(TF, dtype=weight.dtype)
    w_exp = (eye_f[None, :, None, :, None] * w_kco[:, None, :, None, :]
             ).reshape(K, TF * Cin, TF * Fp).astype(mxu_dtype)

    b = bias if bias is not None else jnp.zeros((Fout,), dtype=jnp.float32)
    if Fp != Fout:
        b = jnp.pad(b, (0, Fp - Fout))
    b_tile = jnp.tile(b, TF).reshape(1, TF * Fp).astype(jnp.float32)

    L_in = L.astype(mxu_dtype)

    cost = pl.CostEstimate(
        flops=int(2 * (K - 1) * N * N * F * Cin + 2 * K * N * F * Cin * Fout),
        transcendentals=0,
        bytes_accessed=int(L_in.size * L_in.dtype.itemsize
                           + x2.size * x2.dtype.itemsize
                           + w_exp.size * w_exp.dtype.itemsize
                           + b_tile.size * 4 + N * F * Fp * 4),
    )

    y2 = pl.pallas_call(
        functools.partial(_cheb_gconv_kernel, K=K, lmax=lmax),
        out_shape=jax.ShapeDtypeStruct((N, F * Fp), jnp.float32),
        grid=(n_blocks,),
        in_specs=[
            pl.BlockSpec((N, N), lambda i: (0, 0)),                     # L (resident)
            pl.BlockSpec((N, TF * Cin), lambda i: (0, i)),              # x tile
            pl.BlockSpec((K, TF * Cin, TF * Fp), lambda i: (0, 0, 0)),  # W_exp (res.)
            pl.BlockSpec((1, TF * Fp), lambda i: (0, 0)),               # bias (res.)
        ],
        out_specs=pl.BlockSpec((N, TF * Fp), lambda i: (0, i)),
        compiler_params=pltpu.CompilerParams(
            dimension_semantics=("parallel",),       # megacore sharding on v7x
            vmem_limit_bytes=int(min(48 * 2**20, max(32 * 2**20, 2 * vmem_est))),
        ),
        cost_estimate=cost,
    )(L_in, x2, w_exp, b_tile)

    # Free bitcast: y2[n, f*Fp + o] -> (N, F, Fp); drop the Fout padding if any.
    y = y2.reshape(N, F, Fp)
    return y[:, :, :Fout] if Fp != Fout else y


# ----------------------------------------------------------------------------
# Pure-JAX reference (mirrors the PyTorch forward exactly; correctness only)
# ----------------------------------------------------------------------------
def _reference(x, L, weight, bias, K, lmax=LMAX):
    N, F, Cin = x.shape
    x_flat = jnp.transpose(x, (0, 2, 1)).reshape(N, Cin * F)
    eye = jnp.eye(N, dtype=L.dtype)
    L_t = (2.0 / lmax) * L - eye
    polys = [x_flat]
    if K >= 2:
        polys.append(L_t @ x_flat)
        for _ in range(2, K):
            polys.append(2.0 * (L_t @ polys[-1]) - polys[-2])
    cheb = jnp.stack(polys, axis=0)
    xk = cheb.reshape(K, N, Cin, F).transpose(1, 3, 2, 0).reshape(N * F, Cin * K)
    y = xk @ weight
    if bias is not None:
        y = y + bias
    return y.reshape(N, F, weight.shape[1])


if __name__ == "__main__":
    # Small shapes consistent with the module's forward.  n_features=64 so the
    # planner can produce 2 lane-legal feature tiles (v7x: both TensorCores busy).
    n_batch, n_features, filters_in = 8, 64, 4
    receptive_field_k = 3
    filters_out = 32

    key = jax.random.PRNGKey(0)
    kx, kL, kw, kb = jax.random.split(key, 4)

    x = jax.random.normal(kx, (n_batch, n_features, filters_in), dtype=jnp.float32)

    # Symmetric normalized-Laplacian-like matrix over the batch dimension.
    A = jax.random.uniform(kL, (n_batch, n_batch), dtype=jnp.float32)
    A = 0.5 * (A + A.T)
    d = jnp.sum(A, axis=1)
    Dmh = jnp.diag(1.0 / jnp.sqrt(d))
    L = jnp.eye(n_batch, dtype=jnp.float32) - Dmh @ A @ Dmh

    # Parameter init mirroring reset_parameters(): kaiming_uniform_(a=sqrt(5)) on a
    # 2-D (Cin*K, Fout) weight -> bound = 1/sqrt(fan_in) with fan_in = size(1) = Fout
    # (torch 2-D convention); bias uniform(+-1/sqrt(fan_in)).
    fan_in = filters_out
    bound = 1.0 / math.sqrt(fan_in)
    weight = jax.random.uniform(
        kw, (filters_in * receptive_field_k, filters_out),
        minval=-bound, maxval=bound, dtype=jnp.float32)
    bias = jax.random.uniform(
        kb, (filters_out,), minval=-bound, maxval=bound, dtype=jnp.float32)

    y_ref = _reference(x, L, weight, bias, receptive_field_k)

    # Exact f32 path (matches the PyTorch module's numerics).
    y = dense_cheb_gconv2d(x, L, weight, bias, receptive_field_k)
    y = jax.block_until_ready(y)
    assert y.shape == (n_batch, n_features, filters_out)
    assert jnp.allclose(y, y_ref, atol=1e-4, rtol=1e-4), "f32 mismatch vs reference"

    # bf16-MXU path (feedback item 7): bf16 inputs, f32 accumulation -> ~1e-2 err.
    y_bf = dense_cheb_gconv2d(x, L, weight, bias, receptive_field_k,
                              mxu_dtype=jnp.bfloat16)
    y_bf = jax.block_until_ready(y_bf)
    assert jnp.allclose(y_bf, y_ref, atol=1e-1, rtol=1e-1), "bf16 mismatch vs reference"

    print("KERNEL_OK")
</pallas_src>

<mosaic_0001>
module attributes {stable_mosaic.version = 11 : i64} {
  func.func @_cheb_gconv_kernel(%arg0: i32, %arg1: memref<8x8xf32, #tpu.memory_space<vmem>>, %arg2: memref<8x128xf32, #tpu.memory_space<vmem>>, %arg3: memref<3x128x1024xf32, #tpu.memory_space<vmem>>, %arg4: memref<1x1024xf32, #tpu.memory_space<vmem>>, %arg5: memref<8x1024xf32, #tpu.memory_space<vmem>>) attributes {dimension_semantics = [#tpu.dimension_semantics<parallel>], iteration_bounds = array<i64: 2>, scalar_prefetch = 0 : i64, scratch_operands = 0 : i64, tpu.core_type = #tpu.core_type<tc>, window_params = [{pipeline_mode = #tpu.pipeline_mode<synchronous>, transform_indices = @transform_0, window_bounds = array<i64: 8, 8>}, {transform_indices = @transform_1, window_bounds = array<i64: 8, 128>}, {pipeline_mode = #tpu.pipeline_mode<synchronous>, transform_indices = @transform_2, window_bounds = array<i64: 3, 128, 1024>}, {pipeline_mode = #tpu.pipeline_mode<synchronous>, transform_indices = @transform_3, window_bounds = array<i64: 1, 1024>}, {transform_indices = @transform_4, window_bounds = array<i64: 8, 1024>}]} {
    %c0 = arith.constant 0 : index
    %c0_0 = arith.constant 0 : index
    %0 = vector.load %arg1[%c0, %c0_0] : memref<8x8xf32, #tpu.memory_space<vmem>>, vector<8x8xf32>
    %c0_1 = arith.constant 0 : index
    %c0_2 = arith.constant 0 : index
    %1 = vector.load %arg2[%c0_1, %c0_2] : memref<8x128xf32, #tpu.memory_space<vmem>>, vector<8x128xf32>
    %c0_3 = arith.constant 0 : index
    %c0_4 = arith.constant 0 : index
    %c0_5 = arith.constant 0 : index
    %2 = vector.load %arg3[%c0_3, %c0_4, %c0_5] : memref<3x128x1024xf32, #tpu.memory_space<vmem>>, vector<1x128x1024xf32>
    %3 = vector.shape_cast %2 : vector<1x128x1024xf32> to vector<128x1024xf32>
    %cst = arith.constant dense<0.000000e+00> : vector<8x1024xf32>
    %4 = tpu.matmul %1, %3, %cst {dimension_numbers = #tpu.dot_dimension_numbers<[1], [0], [0], [1], [0, 0, 1, 1], [], []>} : vector<8x128xf32>, vector<128x1024xf32>, vector<8x1024xf32> -> vector<8x1024xf32>
    %cst_6 = arith.constant dense<0.000000e+00> : vector<8x128xf32>
    %5 = tpu.matmul %0, %1, %cst_6 {dimension_numbers = #tpu.dot_dimension_numbers<[1], [0], [0], [1], [0, 0, 1, 1], [], []>} : vector<8x8xf32>, vector<8x128xf32>, vector<8x128xf32> -> vector<8x128xf32>
    %cst_7 = arith.constant 1.000000e+00 : f32
    %6 = vector.broadcast %cst_7 : f32 to vector<8x128xf32>
    %7 = arith.mulf %6, %5 : vector<8x128xf32>
    %8 = arith.subf %7, %1 : vector<8x128xf32>
    %c1 = arith.constant 1 : index
    %c0_8 = arith.constant 0 : index
    %c0_9 = arith.constant 0 : index
    %9 = vector.load %arg3[%c1, %c0_8, %c0_9] : memref<3x128x1024xf32, #tpu.memory_space<vmem>>, vector<1x128x1024xf32>
    %10 = vector.shape_cast %9 : vector<1x128x1024xf32> to vector<128x1024xf32>
    %cst_10 = arith.constant dense<0.000000e+00> : vector<8x1024xf32>
    %11 = tpu.matmul %8, %10, %cst_10 {dimension_numbers = #tpu.dot_dimension_numbers<[1], [0], [0], [1], [0, 0, 1, 1], [], []>} : vector<8x128xf32>, vector<128x1024xf32>, vector<8x1024xf32> -> vector<8x1024xf32>
    %12 = arith.addf %4, %11 : vector<8x1024xf32>
    %cst_11 = arith.constant dense<0.000000e+00> : vector<8x128xf32>
    %13 = tpu.matmul %0, %8, %cst_11 {dimension_numbers = #tpu.dot_dimension_numbers<[1], [0], [0], [1], [0, 0, 1, 1], [], []>} : vector<8x8xf32>, vector<8x128xf32>, vector<8x128xf32> -> vector<8x128xf32>
    %cst_12 = arith.constant 2.000000e+00 : f32
    %14 = vector.broadcast %cst_12 : f32 to vector<8x128xf32>
    %15 = arith.mulf %14, %13 : vector<8x128xf32>
    %cst_13 = arith.constant 2.000000e+00 : f32
    %16 = vector.broadcast %cst_13 : f32 to vector<8x128xf32>
    %17 = arith.mulf %16, %8 : vector<8x128xf32>
    %18 = arith.subf %15, %17 : vector<8x128xf32>
    %19 = arith.subf %18, %1 : vector<8x128xf32>
    %c2 = arith.constant 2 : index
    %c0_14 = arith.constant 0 : index
    %c0_15 = arith.constant 0 : index
    %20 = vector.load %arg3[%c2, %c0_14, %c0_15] : memref<3x128x1024xf32, #tpu.memory_space<vmem>>, vector<1x128x1024xf32>
    %21 = vector.shape_cast %20 : vector<1x128x1024xf32> to vector<128x1024xf32>
    %cst_16 = arith.constant dense<0.000000e+00> : vector<8x1024xf32>
    %22 = tpu.matmul %19, %21, %cst_16 {dimension_numbers = #tpu.dot_dimension_numbers<[1], [0], [0], [1], [0, 0, 1, 1], [], []>} : vector<8x128xf32>, vector<128x1024xf32>, vector<8x1024xf32> -> vector<8x1024xf32>
    %23 = arith.addf %12, %22 : vector<8x1024xf32>
    %c0_17 = arith.constant 0 : index
    %c0_18 = arith.constant 0 : index
    %24 = vector.load %arg4[%c0_17, %c0_18] : memref<1x1024xf32, #tpu.memory_space<vmem>>, vector<1x1024xf32>
    %25 = vector.broadcast %24 : vector<1x1024xf32> to vector<8x1024xf32>
    %26 = arith.addf %23, %25 : vector<8x1024xf32>
    %c0_19 = arith.constant 0 : index
    %c0_20 = arith.constant 0 : index
    %27 = vector.load %arg5[%c0_19, %c0_20] : memref<8x1024xf32, #tpu.memory_space<vmem>>, vector<8x1024xf32>
    tpu.vector_store %arg5[%c0_19, %c0_20], %26 {strides = array<i32>} : memref<8x1024xf32, #tpu.memory_space<vmem>>, vector<8x1024xf32>,
    return
  }
  func.func @transform_0(%arg0: i32) -> (i32, i32) {
    %c0_i32 = arith.constant 0 : i32
    %c0_i32_0 = arith.constant 0 : i32
    %c0_i32_1 = arith.constant 0 : i32
    return %c0_i32, %c0_i32_0 : i32, i32
  }
  func.func @transform_1(%arg0: i32) -> (i32, i32) {
    %c0_i32 = arith.constant 0 : i32
    %c0_i32_0 = arith.constant 0 : i32
    return %c0_i32, %arg0 : i32, i32
  }
  func.func @transform_2(%arg0: i32) -> (i32, i32, i32) {
    %c0_i32 = arith.constant 0 : i32
    %c0_i32_0 = arith.constant 0 : i32
    %c0_i32_1 = arith.constant 0 : i32
    %c0_i32_2 = arith.constant 0 : i32
    return %c0_i32, %c0_i32_0, %c0_i32_1 : i32, i32, i32
  }
  func.func @transform_3(%arg0: i32) -> (i32, i32) {
    %c0_i32 = arith.constant 0 : i32
    %c0_i32_0 = arith.constant 0 : i32
    %c0_i32_1 = arith.constant 0 : i32
    return %c0_i32, %c0_i32_0 : i32, i32
  }
  func.func @transform_4(%arg0: i32) -> (i32, i32) {
    %c0_i32 = arith.constant 0 : i32
    %c0_i32_0 = arith.constant 0 : i32
    return %c0_i32, %arg0 : i32, i32
  }
}

</mosaic_0001>

<bundles_post_ra>
// kernel: tpu_custom_call.1
= control target key start
LH: loop header
LB: loop body
LE: loop exit
PB: predicated region body
PF: predicated region fallthrough
CT: control target
= control target key end

     0   :  { %9 = vsyncpa [#allocation3], 0  ;;  %s2881_s0 = inlined_call_operand.hbm [shape: f32[8,8], index: 0, kind: input, shape index: {}]   ;;  %s2882_s1 = inlined_call_operand.hbm [shape: f32[8,256], index: 1, kind: input, shape index: {}]   ;;  %s2883_s2 = inlined_call_operand.hbm [shape: f32[3,128,1024], index: 2, kind: input, shape index: {}]   ;;  %s2884_s3 = inlined_call_operand.hbm [shape: f32[1,1024], index: 3, kind: input, shape index: {}]   ;;  %s2885_s4 = inlined_call_operand.hbm [shape: f32[8,2048], index: 4, kind: output, shape index: {}]  }
   0x1   :  { %10 = vsyncpa [#allocation6], 0 }
   0x2   :  { %12 = vsyncpa [#allocation6 + $0x1], 0 }
   0x3   :  { %13 = vsyncpa [#allocation9], 0 }
   0x4   :  { %14 = vsyncpa [#allocation4], 0 }
   0x5   :  { %16 = vsyncpa [#allocation4 + $0x1], 0  ;;  %s2572_s15 = smov 0   ;;  %s2574_s16 = smov 0  }
   0x6   :  { %s2576_s17 = smov 0   ;;  %s2578_s18 = smov 0  }
   0x7 LB: > { %s2593_s19 = sadd.s32 4294967295, %s2536_s18   ;;  %s1825_s20 = sadd.s32 4294967294, %s2536_s18   ;;  %s2536_s18 = sphi %s2578_s18, %s2910_s18   ;;  %s2532_s17 = sphi %s2576_s17, %s2909_s17   ;;  %s2528_s16 = sphi %s2574_s16, %s2908_s16   ;;  %s2524_s15 = sphi %s2572_s15, %s2907_s15  }
   0x8   : > { %p63_p0 = scmp.ne.s32.totalorder %s2528_s16, %s2524_s15  ;;  %p2886_p1 = scmp.eq.s32.totalorder %s2593_s19, 0 }
   0x9   : > { %p135_p3 = scmp.eq.s32.totalorder %s1825_s20, 1  ;;  %p1826_p5 = scmp.ge.s32.totalorder %s2536_s18, 1 }
   0xa   : > { %p2602_p4 = por %p2886_p1, %p63_p0  ;;  %p142_p7 = scmp.lt.s32.totalorder %s2536_s18, 3 }
   0xb   : > { %p2607_p6 = por %p135_p3, %p63_p0  ;;  %s2538_s24 = smov [#allocation7]  }
   0xc   : > { %s2889_s21 = scalar_select %p2602_p4, 1, 0 }
   0xd   : > { %s2890_s22 = scalar_select %p2607_p6, 1, 0 }
   0xe   : > { %p2612_p8 = pnand %p1826_p5, %p142_p7  ;;  %s165_s25 = sshll.u32 %s2538_s24, 4  ;;  %s2616_s25 = int_to_ptr.vmem [resolvable:$true] %s165_s25 }
   0xf   : > { %s2539_s27 = smov [#allocation2]   ;;  %s2540_s29 = smov [#allocation8]  }
  0x10   : > { %s2891_s23 = scalar_select %p2612_p8, 1, 0 }
  0x11   : > { %p2277_p9 = pneg %p2612_p8  ;;  %s155_s28 = sshll.u32 %s2539_s27, 4  ;;  %s2627_s28 = int_to_ptr.vmem [resolvable:$true] %s155_s28 }
  0x12   : > { %s2629_s30 = sshll.u32 %s2540_s29, 4  ;;  %s2344_s7 = scalar_lea.hbm %s2883_s2, 49152  ;;  %s180_s30 = int_to_ptr.vmem [resolvable:$true] %s2629_s30 }
  0x13   : > { %p2623_p11 = pnand %p2277_p9, %p2886_p1  ;;  %p2345_p12 = scmp.ne.s32.totalorder %s2883_s2, %s2344_s7 }
  0x14   : > { %p2351_p5 = scmp.lt.u32.totalorder %s2344_s7, %s2883_s2 }
  0x15   : > { %p2639_p13 = pneg %p2623_p11 }
  0x17   : > { %p2347_p0 = pnand %p2639_p13, %p2345_p12 }
  0x19   : > { %p2348_p3 = pneg %p2347_p0 }
  0x1b   : > { %p2353_p7 = pnand %p2351_p5, %p2348_p3 }
  0x1d   : > { %2356 = shalt.err (!%p2353_p7)
}
  0x1e   : > { %s2357_s13 = scalar_lea.vmem %s2616_s25, 49152  ;;  %p2365_p2 = scmp.lt.s32.totalorder %s2616_s25, %s2616_s25 }
  0x1f   : > { %p2358_p9 = scmp.ne.s32.totalorder %s2616_s25, %s2357_s13  ;;  %p2366_p6 = scmp.lt.s32.totalorder %s2357_s13, %s2357_s13 }
  0x21   : > { %p2360_p10 = pnand %p2358_p9, %p2639_p13  ;;  %p2367_p12 = por %p2366_p6, %p2365_p2 }
  0x23   : > { %p2361_p1 = pneg %p2360_p10 }
  0x25   : > { %p2368_p0 = pnand %p2367_p12, %p2361_p1 }
  0x27   : > { %2371 = shalt.err (!%p2368_p0)
}
  0x28   : > { %s2541_s14 = smov 1024   ;;  %s2542_s20 = smov 64  }
  0x29   : > { %2283 = dma.hbm_to_vmem [thread:$0]  (!%p2623_p11), %s2883_s2, 49152, %s2616_s25, [#allocation6], %s2541_s14, %s2541_s14, %s2542_s20  }
  0x2a   : > { %s2372_s6 = scalar_lea.hbm %s2881_s0, 128 }
  0x2b   : > { %p2373_p2 = scmp.ne.s32.totalorder %s2881_s0, %s2372_s6  ;;  %p2379_p10 = scmp.lt.u32.totalorder %s2372_s6, %s2881_s0 }
  0x2d   : > { %p2375_p1 = pnand %p2373_p2, %p2639_p13 }
  0x2f   : > { %p2376_p6 = pneg %p2375_p1 }
  0x31   : > { %p2381_p3 = pnand %p2379_p10, %p2376_p6 }
  0x33   : > { %2384 = shalt.err (!%p2381_p3)
}
  0x34   : > { %s2385_s25 = scalar_lea.vmem %s2627_s28, 128  ;;  %p2393_p12 = scmp.lt.s32.totalorder %s2627_s28, %s2627_s28 }
  0x35   : > { %p2386_p5 = scmp.ne.s32.totalorder %s2627_s28, %s2385_s25  ;;  %p2394_p0 = scmp.lt.s32.totalorder %s2385_s25, %s2385_s25 }
  0x37   : > { %p2388_p7 = pnand %p2386_p5, %p2639_p13  ;;  %p2395_p2 = por %p2394_p0, %p2393_p12 }
  0x39   : > { %p2389_p9 = pneg %p2388_p7 }
  0x3b   : > { %p2396_p1 = pnand %p2395_p2, %p2389_p9 }
  0x3d   : > { %2399 = shalt.err (!%p2396_p1)
}
  0x3e   : > { %2280 = dma.hbm_to_vmem [thread:$0]  (!%p2623_p11), %s2881_s0, 128, %s2627_s28, [#allocation3]  }
  0x3f   : > { %s2400_s24 = scalar_lea.hbm %s2884_s3, 128 }
  0x40   : > { %p2401_p6 = scmp.ne.s32.totalorder %s2884_s3, %s2400_s24  ;;  %p2407_p5 = scmp.lt.u32.totalorder %s2400_s24, %s2884_s3 }
  0x42   : > { %p2403_p10 = pnand %p2401_p6, %p2639_p13 }
  0x44   : > { %p2404_p3 = pneg %p2403_p10 }
  0x46   : > { %p2409_p7 = pnand %p2407_p5, %p2404_p3 }
  0x48   : > { %2412 = shalt.err (!%p2409_p7)
}
  0x49   : > { %s2413_s7 = scalar_lea.vmem %s180_s30, 128  ;;  %p2421_p2 = scmp.lt.s32.totalorder %s180_s30, %s180_s30 }
  0x4a   : > { %p2414_p9 = scmp.ne.s32.totalorder %s180_s30, %s2413_s7  ;;  %p2422_p1 = scmp.lt.s32.totalorder %s2413_s7, %s2413_s7 }
  0x4c   : > { %p2416_p12 = pnand %p2414_p9, %p2639_p13  ;;  %p2423_p4 = por %p2422_p1, %p2421_p2 }
  0x4e   : > { %p2417_p0 = pneg %p2416_p12 }
  0x50   : > { %p2424_p8 = pnand %p2423_p4, %p2417_p0 }
  0x52   : > { %2427 = shalt.err (!%p2424_p8)
}
  0x53   : > { %2286 = dma.hbm_to_vmem [thread:$0]  (!%p2623_p11), %s2884_s3, 128, %s180_s30, [#allocation9]  }
  0x54   : > { %s2703_s10 = sadd.s32 1, %s2536_s18   ;;  %s50_s9 = sadd.s32 1, %s2532_s17 }
  0x55   : > { %s47_s26 = ssub.s32 %s2536_s18, %s2703_s10  ;;  %p57_p8 = scmp.ne.s32.totalorder %s2532_s17, %s2528_s16 }
  0x56   : > { %p48_p4 = scmp.eq.s32.totalorder %s47_s26, 0  ;;  %p58_p13 = scmp.eq.s32.totalorder %s2536_s18, 0 }
  0x57   : > { %p2298_p6 = scmp.lt.s32.totalorder %s2536_s18, 2  ;;  %p2894_p3 = scmp.eq.s32.totalorder %s2593_s19, 1 }
  0x58   : > { %s2713_s11 = scalar_select %p48_p4, %s2532_s17, %s50_s9  }
  0x59   : > { %p59_p10 = por %p58_p13, %p57_p8  ;;  %p2717_p5 = por %p2894_p3, %p57_p8 }
  0x5a   : > { %s190_s12 = sand.u32 1, %s2536_s18   ;;  %s192_s13 = sand.u32 1, %s2532_s17  }
  0x5b   : > { %s1831_s30 = sshll.u32 %s192_s13, 3  ;;  %s1832_s14 = sshll.u32 %s2536_s18, 7 }
  0x5c   : > { %s2727_s27 = scalar_lea.hbm %s2882_s1, %s1832_s14  ;;  %s194_s29 = scalar_lea.vmem [#allocation5], %s1831_s30 }
  0x5d   : > { %s201_s5 = sshll.u32 %s194_s29, 4  ;;  %p2731_p11 = pnand %p2298_p6, %p59_p10  ;;  %s2729_s5 = int_to_ptr.vmem [resolvable:$true] %s201_s5 }
  0x5e   : > { %s191_s7 = scalar_lea.sflag [#allocation6], %s190_s12  ;;  %s2428_s28 = scalar_lea.hbm %s2727_s27, 128 }
  0x5f   : > { %p2429_p7 = scmp.ne.s32.totalorder %s2727_s27, %s2428_s28  ;;  %p2430_p9 = pneg %p2731_p11 }
  0x60   : > { %s2433_s9 = scalar_lea.hbm %s2882_s1, 256  ;;  %p2434_p2 = scmp.lt.u32.totalorder %s2727_s27, %s2882_s1 }
  0x61   : > { %p2431_p12 = pnand %p2430_p9, %p2429_p7  ;;  %p2435_p1 = scmp.lt.u32.totalorder %s2433_s9, %s2428_s28 }
  0x62   : > { %p2437_p8 = scmp.lt.u32.totalorder %s2428_s28, %s2727_s27 }
  0x63   : > { %p2432_p0 = pneg %p2431_p12  ;;  %p2436_p4 = por %p2435_p1, %p2434_p2 }
  0x65   : > { %p2438_p13 = por %p2437_p8, %p2436_p4 }
  0x67   : > { %p2439_p6 = pnand %p2438_p13, %p2432_p0 }
  0x69   : > { %2442 = shalt.err (!%p2439_p6)
}
  0x6a   : > { %s2443_s12 = scalar_lea.vmem %s2729_s5, 128  ;;  %s2543_s14 = smov [#allocation5]  }
  0x6b   : > { %p2444_p10 = scmp.ne.s32.totalorder %s2729_s5, %s2443_s12  ;;  %s2448_s20 = sshll.u32 %s2543_s14, 4  ;;  %s2449_s20 = int_to_ptr.vmem [resolvable:$false] %s2448_s20 }
  0x6c   : > { %s2450_s24 = scalar_lea.vmem %s2449_s20, 256  ;;  %p2451_p12 = scmp.lt.s32.totalorder %s2729_s5, %s2449_s20 }
  0x6d   : > { %p2446_p3 = pnand %p2444_p10, %p2430_p9  ;;  %p2452_p2 = scmp.lt.s32.totalorder %s2450_s24, %s2443_s12 }
  0x6f   : > { %p2447_p7 = pneg %p2446_p3  ;;  %p2453_p1 = por %p2452_p2, %p2451_p12 }
  0x71   : > { %p2454_p4 = pnand %p2453_p1, %p2447_p7 }
  0x73   : > { %2457 = shalt.err (!%p2454_p4)
}
  0x74   : > { %2290 = dma.hbm_to_vmem [thread:$0]  (!%p2731_p11), %s2727_s27, 128, %s2729_s5, %s191_s7  }
  0x75   : > { %p2897_p0 = scmp.ne.s32.totalorder %s2891_s23, 0 }
  0x76   : > { %p2898_p9 = scmp.eq.s32.totalorder (!%p2897_p0), %s2593_s19, 0 }
  0x77   : > { %210 = sbr.rel (%p2897_p0) target bundleno = 934 (0x3a6), region = 36 }
  0x7e   : > { %2503 = dma.done.wait (%p2898_p9), [#allocation3], 128   ;;  %p2899_p8 = pmov %p2898_p9 }
  0x7f   : > { %s216_s29 = sand.u32 1, %s2593_s19   ;;  %s2768_s28 = sand.u32 1, %s2528_s16  }
  0x80   : > { %2505 = vsyncadd (%p2899_p8), [#allocation3], 4294967168  ;;  %s1835_s6 = sshll.u32 %s2768_s28, 3  ;;  %s217_s8 = scalar_lea.sflag [#allocation6], %s216_s29 }
  0x81   : > { %s2771_s26 = scalar_lea.vmem [#allocation5], %s1835_s6  ;;  %p2900_p11 = scmp.ne.s32.totalorder %s2889_s21, 0 }
  0x83   : > { %2507 = dma.done.wait (%p2900_p11), %s217_s8, 128  }
  0x84   : > { %2509 = vsyncadd (%p2900_p11), %s217_s8, 4294967168  ;;  %p2901_p13 = pmov %p2899_p8 }
  0x85   : > { %p2902_p6 = pmov %p2899_p8 }
  0x86   : > { %2511 = dma.done.wait (%p2901_p13), [#allocation6], 49152  }
  0x87   : > { %2513 = vsyncadd (%p2902_p6), [#allocation6], 4294918144  ;;  %p2903_p10 = pmov %p2902_p6 }
  0x88   : > { %p2904_p3 = pmov %p2902_p6 }
  0x89   : > { %2515 = dma.done.wait (%p2903_p10), [#allocation9], 128  }
  0x8a   : > { %2517 = vsyncadd (%p2904_p3), [#allocation9], 4294967168  ;;  %v2544_v0 = vmov 0.0   ;;  %vm2545_vm0 = vmmov 0   ;;  %vm384_vm1 = vcmask 64512   ;;  %v2790_v1 = vld [vmem:[%s2771_s26] sm:$0xff] }
  0x8b   : > { %1851 = vmatprep.subr.mxu0 %v2544_v0  ;;  %1853 = vmatprep.mubr.msk.f32.mxu0 %vm2545_vm0, %v2544_v0  ;;  %v254_v2 = vld [vmem:[#allocation2] sm:$0xff]  ;;  %v463_v5 = vld [vmem:[#allocation7 + $0x418] sm:$0xff]  ;;  %v460_v9 = vld [vmem:[#allocation7 + $0x400] sm:$0xff]  ;;  %s1838_s21 = sshll.u32 %s2768_s28, 6  ;;  %s1846_s27 = sshll.u32 %s2593_s19, 10 }
  0x8c   : > { %652 = vmatprep.mubr.f32.mxu1 %v2544_v0  ;;  %v461_v3 = vld [vmem:[#allocation7 + $0x408] sm:$0xff]  ;;  %1852 = vmatpush3.msra.mxu0 %v2790_v1  ;;  %v471_v6 = vld [vmem:[#allocation7 + $0x458] sm:$0xff]  ;;  %v468_v10 = vld [vmem:[#allocation7 + $0x440] sm:$0xff]  ;;  %s252_s23 = scalar_lea.vmem [#allocation10], %s1838_s21  ;;  %s2837_s13 = scalar_lea.hbm %s2885_s4, %s1846_s27 }
  0x8d   : > { %v469_v4 = vld [vmem:[#allocation7 + $0x448] sm:$0xff]  ;;  %1854 = vmatmul.mubr.msk.f32.vlgmr.msra.gmra.mrb[0].mxu0 %vm384_vm1, %v254_v2  ;;  %v1893_v8 = vpack.c.bf16 %v471_v6, %v463_v5  ;;  %v462_v11 = vld [vmem:[#allocation7 + $0x410] sm:$0xff]  ;;  %v1863_v12 = vpack.c.bf16 %v468_v10, %v460_v9  ;;  %v479_v18 = vld [vmem:[#allocation7 + $0x498] sm:$0xff]  ;;  %s1724_s5 = sshll.u32 %s252_s23, 4  ;;  %s1710_s19 = scalar_lea.sflag [#allocation4], %s2768_s28  ;;  %s2839_s5 = int_to_ptr.vmem [resolvable:$true] %s1724_s5 }
  0x8e   : > { %v1861_v7 = vpack.c.bf16 %v469_v4, %v461_v3  ;;  %v470_v13 = vld [vmem:[#allocation7 + $0x450] sm:$0xff]  ;;  %v477_v14 = vld [vmem:[#allocation7 + $0x488] sm:$0xff]  ;;  %723 = vmatprep.mubr.f32.mxu0 %v2544_v0  ;;  %v487_v19 = vld [vmem:[#allocation7 + $0x4d8] sm:$0xff]  ;;  %s2458_s30 = scalar_lea.vmem %s2839_s5, 1024  ;;  %s2546_s12 = smov [#allocation10]  }
  0x8f   : > { %v485_v15 = vld [vmem:[#allocation7 + $0x4c8] sm:$0xff]  ;;  %1894 = vmatprep.subr.bf16.mxu0 %v1893_v8  ;;  %v1895_v16 = vpack.c.bf16 %v470_v13, %v462_v11  ;;  %v476_v20 = vld [vmem:[#allocation7 + $0x480] sm:$0xff]  ;;  %v1897_v21 = vpack.c.bf16 %v487_v19, %v479_v18  ;;  %v478_v23 = vld [vmem:[#allocation7 + $0x490] sm:$0xff]  ;;  %p2459_p7 = scmp.ne.s32.totalorder %s2839_s5, %s2458_s30  ;;  %s2462_s14 = sshll.u32 %s2546_s12, 4  ;;  %s2463_s14 = int_to_ptr.vmem [resolvable:$false] %s2462_s14 }
  0x90   : > { %1862 = vmatprep.subr.bf16.mxu1 %v1861_v7  ;;  %v1865_v17 = vpack.c.bf16 %v485_v15, %v477_v14  ;;  %v484_v22 = vld [vmem:[#allocation7 + $0x4c0] sm:$0xff]  ;;  %v486_v24 = vld [vmem:[#allocation7 + $0x4d0] sm:$0xff]  ;;  %v493_v27 = vld [vmem:[#allocation7 + $0x508] sm:$0xff]  ;;  %s2464_s20 = scalar_lea.vmem %s2463_s14, 2048  ;;  %p2465_p1 = scmp.lt.s32.totalorder %s2839_s5, %s2463_s14 }
  0x91   : > { %1864 = vmatpush1.bf16.msra.mxu1 %v1863_v12  ;;  %1896 = vmatpush1.bf16.msra.mxu0 %v1895_v16  ;;  %v1867_v25 = vpack.c.bf16 %v484_v22, %v476_v20  ;;  %v1899_v26 = vpack.c.bf16 %v486_v24, %v478_v23  ;;  %v501_v28 = vld [vmem:[#allocation7 + $0x548] sm:$0xff]  ;;  %v495_v29 = vld [vmem:[#allocation7 + $0x518] sm:$0xff]  ;;  %v492_v32 = vld [vmem:[#allocation7 + $0x500] sm:$0xff]  ;;  %p2460_p12 = pnand %p2459_p7, %p2717_p5  ;;  %p2466_p4 = scmp.lt.s32.totalorder %s2464_s20, %s2458_s30 }
  0x92   : > { %1866 = vmatprep.subr.bf16.mxu1 %v1865_v17  ;;  %1898 = vmatprep.subr.bf16.mxu0 %v1897_v21  ;;  %v1869_v30 = vpack.c.bf16 %v501_v28, %v493_v27  ;;  %v503_v31 = vld [vmem:[#allocation7 + $0x558] sm:$0xff]  ;;  %v500_v33 = vld [vmem:[#allocation7 + $0x540] sm:$0xff]  ;;  %v494_v35 = vld [vmem:[#allocation7 + $0x510] sm:$0xff] }
  0x93   : > { %v1901_v34 = vpack.c.bf16 %v503_v31, %v495_v29  ;;  %v502_v36 = vld [vmem:[#allocation7 + $0x550] sm:$0xff]  ;;  %v509_v37 = vld [vmem:[#allocation7 + $0x588] sm:$0xff]  ;;  %v1871_v38 = vpack.c.bf16 %v500_v33, %v492_v32  ;;  %v511_v40 = vld [vmem:[#allocation7 + $0x598] sm:$0xff]  ;;  %p2461_p2 = pneg %p2460_p12  ;;  %p2467_p0 = por %p2466_p4, %p2465_p1 }
  0x94   : > { %v517_v39 = vld [vmem:[#allocation7 + $0x5c8] sm:$0xff]  ;;  %v519_v41 = vld [vmem:[#allocation7 + $0x5d8] sm:$0xff]  ;;  %v1903_v42 = vpack.c.bf16 %v502_v36, %v494_v35  ;;  %v508_v44 = vld [vmem:[#allocation7 + $0x580] sm:$0xff] }
  0x95   : > { %1868 = vmatpush1.bf16.msra.mxu1 %v1867_v25  ;;  %1900 = vmatpush1.bf16.msra.mxu0 %v1899_v26  ;;  %v1873_v43 = vpack.c.bf16 %v517_v39, %v509_v37  ;;  %v516_v45 = vld [vmem:[#allocation7 + $0x5c0] sm:$0xff]  ;;  %v510_v46 = vld [vmem:[#allocation7 + $0x590] sm:$0xff]  ;;  %v1905_v47 = vpack.c.bf16 %v519_v41, %v511_v40  ;;  %v525_v49 = vld [vmem:[#allocation7 + $0x608] sm:$0xff]  ;;  %p2468_p9 = pnand %p2467_p0, %p2461_p2 }
  0x96   : > { %1870 = vmatprep.subr.bf16.mxu1 %v1869_v30  ;;  %1902 = vmatprep.subr.bf16.mxu0 %v1901_v34  ;;  %v518_v48 = vld [vmem:[#allocation7 + $0x5d0] sm:$0xff]  ;;  %v533_v50 = vld [vmem:[#allocation7 + $0x648] sm:$0xff]  ;;  %v527_v51 = vld [vmem:[#allocation7 + $0x618] sm:$0xff]  ;;  %v1875_v53 = vpack.c.bf16 %v516_v45, %v508_v44 }
  0x97   : > { %v535_v52 = vld [vmem:[#allocation7 + $0x658] sm:$0xff]  ;;  %v1907_v54 = vpack.c.bf16 %v518_v48, %v510_v46  ;;  %v1877_v55 = vpack.c.bf16 %v533_v50, %v525_v49  ;;  %v524_v56 = vld [vmem:[#allocation7 + $0x600] sm:$0xff]  ;;  %v526_v58 = vld [vmem:[#allocation7 + $0x610] sm:$0xff] }
  0x98   : > { %v532_v57 = vld [vmem:[#allocation7 + $0x640] sm:$0xff]  ;;  %v1909_v59 = vpack.c.bf16 %v535_v52, %v527_v51  ;;  %v534_v60 = vld [vmem:[#allocation7 + $0x650] sm:$0xff]  ;;  %v541_v61 = vld [vmem:[#allocation7 + $0x688] sm:$0xff] }
  0x99   : > { %1872 = vmatpush1.bf16.msra.mxu1 %v1871_v38  ;;  %1904 = vmatpush1.bf16.msra.mxu0 %v1903_v42  ;;  %v549_v62 = vld [vmem:[#allocation7 + $0x6c8] sm:$0xff]  ;;  %v543_v63 = vld [vmem:[#allocation7 + $0x698] sm:$0xff]  ;;  %v1879_v3 = vpack.c.bf16 %v532_v57, %v524_v56  ;;  %v1911_v4 = vpack.c.bf16 %v534_v60, %v526_v58  ;;  %v540_v6 = vld [vmem:[#allocation7 + $0x680] sm:$0xff] }
  0x9a   : > { %1874 = vmatprep.subr.bf16.mxu1 %v1873_v43  ;;  %1906 = vmatprep.subr.bf16.mxu0 %v1905_v47  ;;  %v551_v2 = vld [vmem:[#allocation7 + $0x6d8] sm:$0xff]  ;;  %v1881_v5 = vpack.c.bf16 %v549_v62, %v541_v61  ;;  %v548_v7 = vld [vmem:[#allocation7 + $0x6c0] sm:$0xff]  ;;  %v542_v8 = vld [vmem:[#allocation7 + $0x690] sm:$0xff] }
  0x9b   : > { %v1913_v9 = vpack.c.bf16 %v551_v2, %v543_v63  ;;  %v550_v10 = vld [vmem:[#allocation7 + $0x6d0] sm:$0xff]  ;;  %v557_v11 = vld [vmem:[#allocation7 + $0x708] sm:$0xff]  ;;  %v559_v13 = vld [vmem:[#allocation7 + $0x718] sm:$0xff]  ;;  %v1883_v15 = vpack.c.bf16 %v548_v7, %v540_v6 }
  0x9c   : > { %v565_v12 = vld [vmem:[#allocation7 + $0x748] sm:$0xff]  ;;  %v567_v14 = vld [vmem:[#allocation7 + $0x758] sm:$0xff]  ;;  %v1915_v16 = vpack.c.bf16 %v550_v10, %v542_v8  ;;  %v556_v18 = vld [vmem:[#allocation7 + $0x700] sm:$0xff] }
  0x9d   : > { %1876 = vmatpush1.bf16.msra.mxu1 %v1875_v53  ;;  %1908 = vmatpush1.bf16.msra.mxu0 %v1907_v54  ;;  %v1885_v17 = vpack.c.bf16 %v565_v12, %v557_v11  ;;  %v564_v19 = vld [vmem:[#allocation7 + $0x740] sm:$0xff]  ;;  %v558_v20 = vld [vmem:[#allocation7 + $0x710] sm:$0xff]  ;;  %v1917_v21 = vpack.c.bf16 %v567_v14, %v559_v13  ;;  %v573_v23 = vld [vmem:[#allocation7 + $0x788] sm:$0xff] }
  0x9e   : > { %1878 = vmatprep.subr.bf16.mxu1 %v1877_v55  ;;  %1910 = vmatprep.subr.bf16.mxu0 %v1909_v59  ;;  %v566_v22 = vld [vmem:[#allocation7 + $0x750] sm:$0xff]  ;;  %v581_v24 = vld [vmem:[#allocation7 + $0x7c8] sm:$0xff]  ;;  %v575_v25 = vld [vmem:[#allocation7 + $0x798] sm:$0xff]  ;;  %v1887_v27 = vpack.c.bf16 %v564_v19, %v556_v18 }
  0x9f   : > { %v583_v26 = vld [vmem:[#allocation7 + $0x7d8] sm:$0xff]  ;;  %v1919_v28 = vpack.c.bf16 %v566_v22, %v558_v20  ;;  %v1889_v29 = vpack.c.bf16 %v581_v24, %v573_v23  ;;  %v572_v30 = vld [vmem:[#allocation7 + $0x780] sm:$0xff]  ;;  %v574_v33 = vld [vmem:[#allocation7 + $0x790] sm:$0xff] }
  0xa0   : > { %v580_v31 = vld [vmem:[#allocation7 + $0x7c0] sm:$0xff]  ;;  %v1921_v32 = vpack.c.bf16 %v583_v26, %v575_v25  ;;  %v582_v34 = vld [vmem:[#allocation7 + $0x7d0] sm:$0xff]  ;;  %v465_v37 = vld [vmem:[#allocation7 + $0x428] sm:$0xff] }
  0xa1   : > { %1880 = vmatpush1.bf16.msra.mxu1 %v1879_v3  ;;  %1912 = vmatpush1.bf16.msra.mxu0 %v1911_v4  ;;  %v1891_v35 = vpack.c.bf16 %v580_v31, %v572_v30  ;;  %v1923_v36 = vpack.c.bf16 %v582_v34, %v574_v33  ;;  %v473_v38 = vld [vmem:[#allocation7 + $0x468] sm:$0xff]  ;;  %v467_v39 = vld [vmem:[#allocation7 + $0x438] sm:$0xff]  ;;  %v464_v43 = vld [vmem:[#allocation7 + $0x420] sm:$0xff] }
  0xa2   : > { %1882 = vmatprep.subr.bf16.mxu1 %v1881_v5  ;;  %1914 = vmatprep.subr.bf16.mxu0 %v1913_v9  ;;  %v1925_v40 = vpack.c.bf16 %v473_v38, %v465_v37  ;;  %v475_v41 = vld [vmem:[#allocation7 + $0x478] sm:$0xff]  ;;  %v472_v44 = vld [vmem:[#allocation7 + $0x460] sm:$0xff]  ;;  %v466_v45 = vld [vmem:[#allocation7 + $0x430] sm:$0xff] }
  0xa3   : > { %v1957_v42 = vpack.c.bf16 %v475_v41, %v467_v39  ;;  %v474_v46 = vld [vmem:[#allocation7 + $0x470] sm:$0xff]  ;;  %v481_v47 = vld [vmem:[#allocation7 + $0x4a8] sm:$0xff]  ;;  %v483_v49 = vld [vmem:[#allocation7 + $0x4b8] sm:$0xff]  ;;  %v1927_v52 = vpack.c.bf16 %v472_v44, %v464_v43 }
  0xa4   : > { %v489_v48 = vld [vmem:[#allocation7 + $0x4e8] sm:$0xff]  ;;  %v491_v50 = vld [vmem:[#allocation7 + $0x4f8] sm:$0xff]  ;;  %v1959_v53 = vpack.c.bf16 %v474_v46, %v466_v45  ;;  %v480_v54 = vld [vmem:[#allocation7 + $0x4a0] sm:$0xff] }
  0xa5   : > { %1884 = vmatpush1.bf16.msra.mxu1 %v1883_v15  ;;  %1916 = vmatpush1.bf16.msra.mxu0 %v1915_v16  ;;  %v488_v55 = vld [vmem:[#allocation7 + $0x4e0] sm:$0xff]  ;;  %v1929_v58 = vpack.c.bf16 %v489_v48, %v481_v47  ;;  %v1961_v59 = vpack.c.bf16 %v491_v50, %v483_v49  ;;  %v482_v60 = vld [vmem:[#allocation7 + $0x4b0] sm:$0xff]  ;;  %v497_v62 = vld [vmem:[#allocation7 + $0x528] sm:$0xff] }
  0xa6   : > { %1886 = vmatprep.subr.bf16.mxu1 %v1885_v17  ;;  %1918 = vmatprep.subr.bf16.mxu0 %v1917_v21  ;;  %v490_v61 = vld [vmem:[#allocation7 + $0x4f0] sm:$0xff]  ;;  %v505_v63 = vld [vmem:[#allocation7 + $0x568] sm:$0xff]  ;;  %v499_v2 = vld [vmem:[#allocation7 + $0x538] sm:$0xff]  ;;  %v1931_v4 = vpack.c.bf16 %v488_v55, %v480_v54 }
  0xa7   : > { %v507_v3 = vld [vmem:[#allocation7 + $0x578] sm:$0xff]  ;;  %v1963_v5 = vpack.c.bf16 %v490_v61, %v482_v60  ;;  %v496_v6 = vld [vmem:[#allocation7 + $0x520] sm:$0xff]  ;;  %v1933_v8 = vpack.c.bf16 %v505_v63, %v497_v62  ;;  %v498_v10 = vld [vmem:[#allocation7 + $0x530] sm:$0xff] }
  0xa8   : > { %v504_v7 = vld [vmem:[#allocation7 + $0x560] sm:$0xff]  ;;  %v1965_v9 = vpack.c.bf16 %v507_v3, %v499_v2  ;;  %v506_v11 = vld [vmem:[#allocation7 + $0x570] sm:$0xff]  ;;  %v513_v12 = vld [vmem:[#allocation7 + $0x5a8] sm:$0xff] }
  0xa9   : > { %1888 = vmatpush1.bf16.msra.mxu1 %v1887_v27  ;;  %1920 = vmatpush1.bf16.msra.mxu0 %v1919_v28  ;;  %v521_v13 = vld [vmem:[#allocation7 + $0x5e8] sm:$0xff]  ;;  %v515_v14 = vld [vmem:[#allocation7 + $0x5b8] sm:$0xff]  ;;  %v1935_v16 = vpack.c.bf16 %v504_v7, %v496_v6  ;;  %v1967_v17 = vpack.c.bf16 %v506_v11, %v498_v10  ;;  %v512_v18 = vld [vmem:[#allocation7 + $0x5a0] sm:$0xff] }
  0xaa   : > { %1890 = vmatprep.subr.bf16.mxu1 %v1889_v29  ;;  %1922 = vmatprep.subr.bf16.mxu0 %v1921_v32  ;;  %v523_v15 = vld [vmem:[#allocation7 + $0x5f8] sm:$0xff]  ;;  %v520_v19 = vld [vmem:[#allocation7 + $0x5e0] sm:$0xff]  ;;  %v1937_v20 = vpack.c.bf16 %v521_v13, %v513_v12  ;;  %v514_v22 = vld [vmem:[#allocation7 + $0x5b0] sm:$0xff] }
  0xab   : > { %v1969_v21 = vpack.c.bf16 %v523_v15, %v515_v14  ;;  %v522_v23 = vld [vmem:[#allocation7 + $0x5f0] sm:$0xff]  ;;  %v529_v24 = vld [vmem:[#allocation7 + $0x628] sm:$0xff]  ;;  %v531_v26 = vld [vmem:[#allocation7 + $0x638] sm:$0xff]  ;;  %v1939_v28 = vpack.c.bf16 %v520_v19, %v512_v18 }
  0xac   : > { %v537_v25 = vld [vmem:[#allocation7 + $0x668] sm:$0xff]  ;;  %v539_v27 = vld [vmem:[#allocation7 + $0x678] sm:$0xff]  ;;  %v1971_v29 = vpack.c.bf16 %v522_v23, %v514_v22  ;;  %v528_v30 = vld [vmem:[#allocation7 + $0x620] sm:$0xff] }
  0xad   : > { %1892 = vmatpush1.bf16.msra.mxu1 %v1891_v35  ;;  %1924 = vmatpush1.bf16.msra.mxu0 %v1923_v36  ;;  %v536_v31 = vld [vmem:[#allocation7 + $0x660] sm:$0xff]  ;;  %v1941_v32 = vpack.c.bf16 %v537_v25, %v529_v24  ;;  %v1973_v33 = vpack.c.bf16 %v539_v27, %v531_v26  ;;  %v530_v34 = vld [vmem:[#allocation7 + $0x630] sm:$0xff]  ;;  %v545_v36 = vld [vmem:[#allocation7 + $0x6a8] sm:$0xff] }
  0xae   : > { %1926 = vmatprep.subr.bf16.mxu1 %v1925_v40  ;;  %1958 = vmatprep.subr.bf16.mxu0 %v1957_v42  ;;  %v538_v35 = vld [vmem:[#allocation7 + $0x670] sm:$0xff]  ;;  %v553_v37 = vld [vmem:[#allocation7 + $0x6e8] sm:$0xff]  ;;  %v547_v38 = vld [vmem:[#allocation7 + $0x6b8] sm:$0xff]  ;;  %v1943_v40 = vpack.c.bf16 %v536_v31, %v528_v30 }
  0xaf   : > { %v555_v39 = vld [vmem:[#allocation7 + $0x6f8] sm:$0xff]  ;;  %v1975_v41 = vpack.c.bf16 %v538_v35, %v530_v34  ;;  %v544_v42 = vld [vmem:[#allocation7 + $0x6a0] sm:$0xff]  ;;  %v1945_v44 = vpack.c.bf16 %v553_v37, %v545_v36  ;;  %v546_v46 = vld [vmem:[#allocation7 + $0x6b0] sm:$0xff] }
  0xb0   : > { %v552_v43 = vld [vmem:[#allocation7 + $0x6e0] sm:$0xff]  ;;  %v1977_v45 = vpack.c.bf16 %v555_v39, %v547_v38  ;;  %v554_v47 = vld [vmem:[#allocation7 + $0x6f0] sm:$0xff]  ;;  %v561_v48 = vld [vmem:[#allocation7 + $0x728] sm:$0xff] }
  0xb1   : > { %v569_v49 = vld [vmem:[#allocation7 + $0x768] sm:$0xff]  ;;  %v563_v50 = vld [vmem:[#allocation7 + $0x738] sm:$0xff]  ;;  %v560_v54 = vld [vmem:[#allocation7 + $0x720] sm:$0xff] }
  0xb2   : > { %v568_v55 = vld [vmem:[#allocation7 + $0x760] sm:$0xff]  ;;  %v570_v60 = vld [vmem:[#allocation7 + $0x770] sm:$0xff]  ;;  %v577_v61 = vld [vmem:[#allocation7 + $0x7a8] sm:$0xff] }
  0xb3   : > { %v585_v62 = vld [vmem:[#allocation7 + $0x7e8] sm:$0xff]  ;;  %v579_v63 = vld [vmem:[#allocation7 + $0x7b8] sm:$0xff]  ;;  %v1951_v3 = vpack.c.bf16 %v568_v55, %v560_v54  ;;  %v584_v6 = vld [vmem:[#allocation7 + $0x7e0] sm:$0xff] }
  0xb4   : > { %v587_v2 = vld [vmem:[#allocation7 + $0x7f8] sm:$0xff]  ;;  %v1953_v7 = vpack.c.bf16 %v585_v62, %v577_v61  ;;  %v586_v10 = vld [vmem:[#allocation7 + $0x7f0] sm:$0xff]  ;;  %v257_v11 = vld [vmem:[#allocation7 + $0x8] sm:$0xff] }
  0xb5   : > { %v265_v12 = vld [vmem:[#allocation7 + $0x48] sm:$0xff]  ;;  %v259_v13 = vld [vmem:[#allocation7 + $0x18] sm:$0xff]  ;;  %v256_v18 = vld [vmem:[#allocation7] sm:$0xff] }
  0xb6   : > { %v267_v14 = vld [vmem:[#allocation7 + $0x58] sm:$0xff]  ;;  %v264_v19 = vld [vmem:[#allocation7 + $0x40] sm:$0xff]  ;;  %v281_v22 = vld [vmem:[#allocation7 + $0xc8] sm:$0xff] }
  0xb7   : > { %v258_v23 = vld [vmem:[#allocation7 + $0x10] sm:$0xff]  ;;  %v275_v25 = vld [vmem:[#allocation7 + $0x98] sm:$0xff]  ;;  %v1991_v27 = vpack.c.bf16 %v264_v19, %v256_v18  ;;  %v280_v30 = vld [vmem:[#allocation7 + $0xc0] sm:$0xff] }
  0xb8   : > { %v266_v24 = vld [vmem:[#allocation7 + $0x50] sm:$0xff]  ;;  %v283_v26 = vld [vmem:[#allocation7 + $0xd8] sm:$0xff]  ;;  %v289_v31 = vld [vmem:[#allocation7 + $0x108] sm:$0xff] }
  0xb9   : > { %v2025_v34 = vpack.c.bf16 %v283_v26, %v275_v25  ;;  %v274_v35 = vld [vmem:[#allocation7 + $0x90] sm:$0xff]  ;;  %v291_v37 = vld [vmem:[#allocation7 + $0x118] sm:$0xff]  ;;  %v312_v54 = vld [vmem:[#allocation7 + $0x1c0] sm:$0xff] }
  0xba   : > { %v282_v36 = vld [vmem:[#allocation7 + $0xd0] sm:$0xff]  ;;  %v299_v38 = vld [vmem:[#allocation7 + $0x158] sm:$0xff]  ;;  %v321_v55 = vld [vmem:[#allocation7 + $0x208] sm:$0xff] }
  0xbb   : > { %v314_v61 = vld [vmem:[#allocation7 + $0x1d0] sm:$0xff]  ;;  %v323_v62 = vld [vmem:[#allocation7 + $0x218] sm:$0xff]  ;;  %v353_v18 = vld [vmem:[#allocation7 + $0x308] sm:$0xff] }
  0xbc   : > { %v363_v25 = vld [vmem:[#allocation7 + $0x358] sm:$0xff] }
 0x160   : > { %v454_v51 = vpop.f32.mrb[0].mxu0 }
 0x161   : > { %v2796_v56 = vsub.f32 %v454_v51, %v2790_v1  ;;  %v1855_v57 = vpop.f32.mrb[1].mxu0  ;;  %v571_v51 = vld [vmem:[#allocation7 + $0x778] sm:$0xff] }
 0x162   : > { %v1949_v57 = vpack.c.bf16 %v569_v49, %v561_v48  ;;  %v298_v48 = vld [vmem:[#allocation7 + $0x150] sm:$0xff]  ;;  %v307_v49 = vld [vmem:[#allocation7 + $0x198] sm:$0xff] }
 0x163   : > { %653 = vmatmul.mubr.f32.vlgmr.msra.gmra.mrb[0].mxu1 %v2796_v56  ;;  %724 = vmatmul.mubr.f32.vlgmr.msra.gmra.mrb[2].mxu0 %v2796_v56 }
 0x164   : > { %1928 = vmatpush1.bf16.msra.mxu1 %v1927_v52  ;;  %1960 = vmatpush1.bf16.msra.mxu0 %v1959_v53  ;;  %v1947_v52 = vpack.c.bf16 %v552_v43, %v544_v42  ;;  %v1979_v53 = vpack.c.bf16 %v554_v47, %v546_v46  ;;  %v296_v42 = vld [vmem:[#allocation7 + $0x140] sm:$0xff]  ;;  %v305_v43 = vld [vmem:[#allocation7 + $0x188] sm:$0xff]  ;;  %v2029_v46 = vpack.c.bf16 %v299_v38, %v291_v37  ;;  %v290_v47 = vld [vmem:[#allocation7 + $0x110] sm:$0xff] }
 0x165   : > { %1930 = vmatprep.subr.bf16.mxu1 %v1929_v58  ;;  %1962 = vmatprep.subr.bf16.mxu0 %v1961_v59  ;;  %v1981_v58 = vpack.c.bf16 %v571_v51, %v563_v50  ;;  %v562_v59 = vld [vmem:[#allocation7 + $0x730] sm:$0xff]  ;;  %v315_v50 = vld [vmem:[#allocation7 + $0x1d8] sm:$0xff] }
 0x166   : > { %794 = vmatprep.mubr.f32.mxu1 %v2544_v0  ;;  %865 = vmatprep.mubr.f32.mxu0 %v2544_v0  ;;  %v379_v37 = vld [vmem:[#allocation7 + $0x3d8] sm:$0xff] }
 0x168   : > { %1932 = vmatpush1.bf16.msra.mxu1 %v1931_v4  ;;  %1964 = vmatpush1.bf16.msra.mxu0 %v1963_v5  ;;  %v1983_v4 = vpack.c.bf16 %v570_v60, %v562_v59  ;;  %v576_v5 = vld [vmem:[#allocation7 + $0x7a0] sm:$0xff]  ;;  %v2033_v59 = vpack.c.bf16 %v315_v50, %v307_v49  ;;  %v306_v60 = vld [vmem:[#allocation7 + $0x190] sm:$0xff]  ;;  %v271_v49 = vld [vmem:[#allocation7 + $0x78] sm:$0xff] }
 0x169   : > { %1934 = vmatprep.subr.bf16.mxu1 %v1933_v8  ;;  %1966 = vmatprep.subr.bf16.mxu0 %v1965_v9  ;;  %v1985_v8 = vpack.c.bf16 %v587_v2, %v579_v63  ;;  %v578_v9 = vld [vmem:[#allocation7 + $0x7b0] sm:$0xff]  ;;  %v1955_v15 = vpack.c.bf16 %v584_v6, %v576_v5  ;;  %v331_v63 = vld [vmem:[#allocation7 + $0x258] sm:$0xff]  ;;  %v328_v5 = vld [vmem:[#allocation7 + $0x240] sm:$0xff] }
 0x16a   : > { %v337_v6 = vld [vmem:[#allocation7 + $0x288] sm:$0xff] }
 0x16c   : > { %1936 = vmatpush1.bf16.msra.mxu1 %v1935_v16  ;;  %1968 = vmatpush1.bf16.msra.mxu0 %v1967_v17  ;;  %v1987_v16 = vpack.c.bf16 %v586_v10, %v578_v9  ;;  %v1989_v17 = vpack.c.bf16 %v265_v12, %v257_v11  ;;  %v2037_v9 = vpack.c.bf16 %v331_v63, %v323_v62  ;;  %v322_v10 = vld [vmem:[#allocation7 + $0x210] sm:$0xff]  ;;  %v339_v12 = vld [vmem:[#allocation7 + $0x298] sm:$0xff] }
 0x16d   : > { %1938 = vmatprep.subr.bf16.mxu1 %v1937_v20  ;;  %1970 = vmatprep.subr.bf16.mxu0 %v1969_v21  ;;  %v273_v20 = vld [vmem:[#allocation7 + $0x88] sm:$0xff]  ;;  %v2021_v21 = vpack.c.bf16 %v267_v14, %v259_v13  ;;  %v330_v11 = vld [vmem:[#allocation7 + $0x250] sm:$0xff]  ;;  %v347_v13 = vld [vmem:[#allocation7 + $0x2d8] sm:$0xff] }
 0x16e   : > { %v2039_v19 = vpack.c.bf16 %v330_v11, %v322_v10  ;;  %v279_v62 = vld [vmem:[#allocation7 + $0xb8] sm:$0xff]  ;;  %v286_v10 = vld [vmem:[#allocation7 + $0xf0] sm:$0xff] }
 0x16f   : > { %v287_v63 = vld [vmem:[#allocation7 + $0xf8] sm:$0xff] }
 0x170   : > { %1940 = vmatpush1.bf16.msra.mxu1 %v1939_v28  ;;  %1972 = vmatpush1.bf16.msra.mxu0 %v1971_v29  ;;  %v1993_v28 = vpack.c.bf16 %v281_v22, %v273_v20  ;;  %v272_v29 = vld [vmem:[#allocation7 + $0x80] sm:$0xff]  ;;  %v361_v20 = vld [vmem:[#allocation7 + $0x348] sm:$0xff]  ;;  %v338_v22 = vld [vmem:[#allocation7 + $0x290] sm:$0xff] }
 0x171   : > { %1942 = vmatprep.subr.bf16.mxu1 %v1941_v32  ;;  %1974 = vmatprep.subr.bf16.mxu0 %v1973_v33  ;;  %v2023_v32 = vpack.c.bf16 %v266_v24, %v258_v23  ;;  %v297_v33 = vld [vmem:[#allocation7 + $0x148] sm:$0xff]  ;;  %v1995_v39 = vpack.c.bf16 %v280_v30, %v272_v29  ;;  %v346_v23 = vld [vmem:[#allocation7 + $0x2d0] sm:$0xff]  ;;  %v355_v24 = vld [vmem:[#allocation7 + $0x318] sm:$0xff] }
 0x172   : > { %v360_v29 = vld [vmem:[#allocation7 + $0x340] sm:$0xff]  ;;  %v369_v30 = vld [vmem:[#allocation7 + $0x388] sm:$0xff] }
 0x174   : > { %1944 = vmatpush1.bf16.msra.mxu1 %v1943_v40  ;;  %1976 = vmatpush1.bf16.msra.mxu0 %v1975_v41  ;;  %v1997_v40 = vpack.c.bf16 %v297_v33, %v289_v31  ;;  %v288_v41 = vld [vmem:[#allocation7 + $0x100] sm:$0xff]  ;;  %v2043_v31 = vpack.c.bf16 %v346_v23, %v338_v22  ;;  %v2045_v33 = vpack.c.bf16 %v363_v25, %v355_v24  ;;  %v302_v22 = vld [vmem:[#allocation7 + $0x170] sm:$0xff]  ;;  %v311_v24 = vld [vmem:[#allocation7 + $0x1b8] sm:$0xff] }
 0x175   : > { %1946 = vmatprep.subr.bf16.mxu1 %v1945_v44  ;;  %1978 = vmatprep.subr.bf16.mxu0 %v1977_v45  ;;  %v2027_v44 = vpack.c.bf16 %v282_v36, %v274_v35  ;;  %v313_v45 = vld [vmem:[#allocation7 + $0x1c8] sm:$0xff]  ;;  %v1999_v51 = vpack.c.bf16 %v296_v42, %v288_v41  ;;  %v362_v35 = vld [vmem:[#allocation7 + $0x350] sm:$0xff]  ;;  %v371_v36 = vld [vmem:[#allocation7 + $0x398] sm:$0xff] }
 0x176   : > { %v376_v41 = vld [vmem:[#allocation7 + $0x3c0] sm:$0xff]  ;;  %v261_v42 = vld [vmem:[#allocation7 + $0x28] sm:$0xff]  ;;  %v319_v25 = vld [vmem:[#allocation7 + $0x1f8] sm:$0xff] }
 0x178   : > { %1948 = vmatpush1.bf16.msra.mxu1 %v1947_v52  ;;  %1980 = vmatpush1.bf16.msra.mxu0 %v1979_v53  ;;  %v2001_v52 = vpack.c.bf16 %v313_v45, %v305_v43  ;;  %v304_v53 = vld [vmem:[#allocation7 + $0x180] sm:$0xff]  ;;  %v2049_v45 = vpack.c.bf16 %v379_v37, %v371_v36  ;;  %v335_v36 = vld [vmem:[#allocation7 + $0x278] sm:$0xff] }
 0x179   : > { %1950 = vmatprep.subr.bf16.mxu1 %v1949_v57  ;;  %1982 = vmatprep.subr.bf16.mxu0 %v1981_v58  ;;  %v2031_v57 = vpack.c.bf16 %v298_v48, %v290_v47  ;;  %v329_v58 = vld [vmem:[#allocation7 + $0x248] sm:$0xff]  ;;  %v2003_v2 = vpack.c.bf16 %v312_v54, %v304_v53  ;;  %v378_v47 = vld [vmem:[#allocation7 + $0x3d0] sm:$0xff]  ;;  %v263_v48 = vld [vmem:[#allocation7 + $0x38] sm:$0xff] }
 0x17a   : > { %v268_v53 = vld [vmem:[#allocation7 + $0x60] sm:$0xff] }
 0x17c   : > { %1952 = vmatpush1.bf16.msra.mxu1 %v1951_v3  ;;  %1984 = vmatpush1.bf16.msra.mxu0 %v1983_v4  ;;  %v2005_v3 = vpack.c.bf16 %v329_v58, %v321_v55  ;;  %v320_v4 = vld [vmem:[#allocation7 + $0x200] sm:$0xff]  ;;  %v277_v55 = vld [vmem:[#allocation7 + $0xa8] sm:$0xff]  ;;  %v2085_v58 = vpack.c.bf16 %v271_v49, %v263_v48  ;;  %v351_v48 = vld [vmem:[#allocation7 + $0x2f8] sm:$0xff] }
 0x17d   : > { %1954 = vmatprep.subr.bf16.mxu1 %v1953_v7  ;;  %1986 = vmatprep.subr.bf16.mxu0 %v1985_v8  ;;  %v2035_v7 = vpack.c.bf16 %v314_v61, %v306_v60  ;;  %v345_v8 = vld [vmem:[#allocation7 + $0x2c8] sm:$0xff]  ;;  %v2007_v14 = vpack.c.bf16 %v328_v5, %v320_v4  ;;  %v270_v60 = vld [vmem:[#allocation7 + $0x70] sm:$0xff]  ;;  %v284_v4 = vld [vmem:[#allocation7 + $0xe0] sm:$0xff] }
 0x17e   : > { %v293_v5 = vld [vmem:[#allocation7 + $0x128] sm:$0xff] }
 0x180   : > { %1956 = vmatpush1.bf16.msra.mxu1 %v1955_v15  ;;  %1988 = vmatpush1.bf16.msra.mxu0 %v1987_v16  ;;  %v2009_v15 = vpack.c.bf16 %v345_v8, %v337_v6  ;;  %v336_v16 = vld [vmem:[#allocation7 + $0x280] sm:$0xff]  ;;  %v301_v6 = vld [vmem:[#allocation7 + $0x168] sm:$0xff]  ;;  %v2089_v8 = vpack.c.bf16 %v287_v63, %v279_v62 }
 0x181   : > { %1990 = vmatprep.subr.bf16.mxu1 %v1989_v17  ;;  %2022 = vmatprep.subr.bf16.mxu0 %v2021_v21  ;;  %v344_v17 = vld [vmem:[#allocation7 + $0x2c0] sm:$0xff]  ;;  %v2041_v21 = vpack.c.bf16 %v347_v13, %v339_v12  ;;  %v295_v12 = vld [vmem:[#allocation7 + $0x138] sm:$0xff] }
 0x182   : > { %v2011_v26 = vpack.c.bf16 %v344_v17, %v336_v16  ;;  %v303_v13 = vld [vmem:[#allocation7 + $0x178] sm:$0xff]  ;;  %v300_v16 = vld [vmem:[#allocation7 + $0x160] sm:$0xff]  ;;  %v309_v17 = vld [vmem:[#allocation7 + $0x1a8] sm:$0xff] }
 0x183   : > { %795 = vmatmul.mubr.f32.vlgmr.msra.gmra.mrb[2].mxu1 %v2796_v56  ;;  %866 = vmatmul.mubr.f32.vlgmr.msra.gmra.mrb[4].mxu0 %v2796_v56  ;;  %v356_v63 = vld [vmem:[#allocation7 + $0x320] sm:$0xff] }
 0x184   : > { %1992 = vmatpush1.bf16.msra.mxu1 %v1991_v27  ;;  %936 = vmatprep.mubr.f32.mxu1 %v2544_v0  ;;  %v2013_v27 = vpack.c.bf16 %v361_v20, %v353_v18  ;;  %v317_v18 = vld [vmem:[#allocation7 + $0x1e8] sm:$0xff]  ;;  %v2093_v20 = vpack.c.bf16 %v303_v13, %v295_v12  ;;  %v372_v13 = vld [vmem:[#allocation7 + $0x3a0] sm:$0xff] }
 0x185   : > { %1994 = vmatprep.subr.bf16.mxu1 %v1993_v28  ;;  %2024 = vmatpush1.bf16.msra.mxu0 %v2023_v32  ;;  %v352_v28 = vld [vmem:[#allocation7 + $0x300] sm:$0xff]  ;;  %v377_v32 = vld [vmem:[#allocation7 + $0x3c8] sm:$0xff] }
 0x186   : > { %2026 = vmatprep.subr.bf16.mxu0 %v2025_v34  ;;  %1007 = vmatprep.mubr.f32.mxu0 %v2544_v0  ;;  %v354_v34 = vld [vmem:[#allocation7 + $0x310] sm:$0xff]  ;;  %v2015_v38 = vpack.c.bf16 %v360_v29, %v352_v28  ;;  %v316_v28 = vld [vmem:[#allocation7 + $0x1e0] sm:$0xff]  ;;  %v325_v29 = vld [vmem:[#allocation7 + $0x228] sm:$0xff] }
 0x187   : > { %v2047_v43 = vpack.c.bf16 %v362_v35, %v354_v34  ;;  %v327_v35 = vld [vmem:[#allocation7 + $0x238] sm:$0xff] }
 0x188   : > { %1996 = vmatpush1.bf16.msra.mxu1 %v1995_v39  ;;  %v2017_v39 = vpack.c.bf16 %v377_v32, %v369_v30  ;;  %v310_v32 = vld [vmem:[#allocation7 + $0x1b0] sm:$0xff] }
 0x189   : > { %1998 = vmatprep.subr.bf16.mxu1 %v1997_v40  ;;  %2028 = vmatpush1.bf16.msra.mxu0 %v2027_v44  ;;  %v368_v40 = vld [vmem:[#allocation7 + $0x380] sm:$0xff]  ;;  %v269_v44 = vld [vmem:[#allocation7 + $0x68] sm:$0xff] }
 0x18a   : > { %2030 = vmatprep.subr.bf16.mxu0 %v2029_v46  ;;  %v370_v46 = vld [vmem:[#allocation7 + $0x390] sm:$0xff]  ;;  %v2019_v50 = vpack.c.bf16 %v376_v41, %v368_v40  ;;  %v341_v40 = vld [vmem:[#allocation7 + $0x2a8] sm:$0xff] }
 0x18b   : > { %v2051_v54 = vpack.c.bf16 %v378_v47, %v370_v46  ;;  %v349_v41 = vld [vmem:[#allocation7 + $0x2e8] sm:$0xff]  ;;  %v343_v47 = vld [vmem:[#allocation7 + $0x2b8] sm:$0xff] }
 0x18c   : > { %2000 = vmatpush1.bf16.msra.mxu1 %v1999_v51  ;;  %v2053_v51 = vpack.c.bf16 %v269_v44, %v261_v42  ;;  %v326_v44 = vld [vmem:[#allocation7 + $0x230] sm:$0xff]  ;;  %v2073_v49 = vpack.c.bf16 %v349_v41, %v341_v40  ;;  %v1266_v40 = vld [vmem:[#allocation7 + $0x918] sm:$0xff] }
 0x18d   : > { %2002 = vmatprep.subr.bf16.mxu1 %v2001_v52  ;;  %2032 = vmatpush1.bf16.msra.mxu0 %v2031_v57  ;;  %v260_v52 = vld [vmem:[#allocation7 + $0x20] sm:$0xff]  ;;  %v285_v57 = vld [vmem:[#allocation7 + $0xe8] sm:$0xff]  ;;  %v1274_v41 = vld [vmem:[#allocation7 + $0x958] sm:$0xff] }
 0x18e   : > { %2034 = vmatprep.subr.bf16.mxu0 %v2033_v59  ;;  %v262_v59 = vld [vmem:[#allocation7 + $0x30] sm:$0xff]  ;;  %v2055_v61 = vpack.c.bf16 %v268_v53, %v260_v52  ;;  %v357_v52 = vld [vmem:[#allocation7 + $0x328] sm:$0xff] }
 0x18f   : > { %v365_v53 = vld [vmem:[#allocation7 + $0x368] sm:$0xff] }
 0x190   : > { %2004 = vmatpush1.bf16.msra.mxu1 %v2003_v2  ;;  %v2057_v2 = vpack.c.bf16 %v285_v57, %v277_v55  ;;  %v2105_v55 = vpack.c.bf16 %v351_v48, %v343_v47  ;;  %v342_v57 = vld [vmem:[#allocation7 + $0x2b0] sm:$0xff]  ;;  %v2077_v62 = vpack.c.bf16 %v365_v53, %v357_v52  ;;  %v1272_v47 = vld [vmem:[#allocation7 + $0x948] sm:$0xff]  ;;  %v1282_v53 = vld [vmem:[#allocation7 + $0x998] sm:$0xff] }
 0x191   : > { %2006 = vmatprep.subr.bf16.mxu1 %v2005_v3  ;;  %2036 = vmatpush1.bf16.msra.mxu0 %v2035_v7  ;;  %v276_v3 = vld [vmem:[#allocation7 + $0xa0] sm:$0xff]  ;;  %v2087_v7 = vpack.c.bf16 %v270_v60, %v262_v59  ;;  %v359_v60 = vld [vmem:[#allocation7 + $0x338] sm:$0xff]  ;;  %v2343_v48 = vld [vmem:[#allocation2] sm:$0xff] }
 0x192   : > { %2038 = vmatprep.subr.bf16.mxu0 %v2037_v9  ;;  %v278_v9 = vld [vmem:[#allocation7 + $0xb0] sm:$0xff]  ;;  %v2059_v11 = vpack.c.bf16 %v284_v4, %v276_v3  ;;  %v373_v3 = vld [vmem:[#allocation7 + $0x3a8] sm:$0xff] }
 0x193   : > { %v381_v4 = vld [vmem:[#allocation7 + $0x3e8] sm:$0xff] }
 0x194   : > { %2008 = vmatpush1.bf16.msra.mxu1 %v2007_v14  ;;  %v2061_v14 = vpack.c.bf16 %v301_v6, %v293_v5  ;;  %v2081_v12 = vpack.c.bf16 %v381_v4, %v373_v3  ;;  %v1298_v4 = vld [vmem:[#allocation7 + $0xa18] sm:$0xff] }
 0x195   : > { %2010 = vmatprep.subr.bf16.mxu1 %v2009_v15  ;;  %2040 = vmatpush1.bf16.msra.mxu0 %v2039_v19  ;;  %v292_v15 = vld [vmem:[#allocation7 + $0x120] sm:$0xff]  ;;  %v2091_v19 = vpack.c.bf16 %v286_v10, %v278_v9  ;;  %v375_v10 = vld [vmem:[#allocation7 + $0x3b8] sm:$0xff] }
 0x196   : > { %2042 = vmatprep.subr.bf16.mxu0 %v2041_v21  ;;  %v294_v21 = vld [vmem:[#allocation7 + $0x130] sm:$0xff]  ;;  %v2063_v23 = vpack.c.bf16 %v300_v16, %v292_v15 }
 0x197   : > { %v2095_v30 = vpack.c.bf16 %v302_v22, %v294_v21  ;;  %v1242_v21 = vld [vmem:[#allocation7 + $0x858] sm:$0xff] }
 0x198   : > { %2012 = vmatpush1.bf16.msra.mxu1 %v2011_v26  ;;  %v2065_v26 = vpack.c.bf16 %v317_v18, %v309_v17  ;;  %v374_v17 = vld [vmem:[#allocation7 + $0x3b0] sm:$0xff] }
 0x199   : > { %2014 = vmatprep.subr.bf16.mxu1 %v2013_v27  ;;  %2044 = vmatpush1.bf16.msra.mxu0 %v2043_v31  ;;  %v308_v27 = vld [vmem:[#allocation7 + $0x1a0] sm:$0xff]  ;;  %v2097_v31 = vpack.c.bf16 %v319_v25, %v311_v24  ;;  %v382_v18 = vld [vmem:[#allocation7 + $0x3f0] sm:$0xff]  ;;  %v1240_v24 = vld [vmem:[#allocation7 + $0x848] sm:$0xff] }
 0x19a   : > { %2046 = vmatprep.subr.bf16.mxu0 %v2045_v33  ;;  %v318_v33 = vld [vmem:[#allocation7 + $0x1f0] sm:$0xff]  ;;  %v2067_v34 = vpack.c.bf16 %v316_v28, %v308_v27  ;;  %v2115_v22 = vpack.c.bf16 %v382_v18, %v374_v17  ;;  %v1250_v28 = vld [vmem:[#allocation7 + $0x898] sm:$0xff] }
 0x19b   : > { %v2099_v42 = vpack.c.bf16 %v318_v33, %v310_v32  ;;  %v1241_v27 = vld [vmem:[#allocation7 + $0x850] sm:$0xff]  ;;  %v1248_v33 = vld [vmem:[#allocation7 + $0x888] sm:$0xff]  ;;  %v1322_v17 = vld [vmem:[#allocation7 + $0xad8] sm:$0xff] }
 0x19c   : > { %2016 = vmatpush1.bf16.msra.mxu1 %v2015_v38  ;;  %v324_v38 = vld [vmem:[#allocation7 + $0x220] sm:$0xff] }
 0x19d   : > { %2018 = vmatprep.subr.bf16.mxu1 %v2017_v39  ;;  %2048 = vmatpush1.bf16.msra.mxu0 %v2047_v43  ;;  %v332_v39 = vld [vmem:[#allocation7 + $0x260] sm:$0xff]  ;;  %v2101_v43 = vpack.c.bf16 %v335_v36, %v327_v35  ;;  %v2812_v35 = vld [vmem:[%s2771_s26] sm:$0xff] }
 0x19e   : > { %2050 = vmatprep.subr.bf16.mxu0 %v2049_v45  ;;  %v334_v45 = vld [vmem:[#allocation7 + $0x270] sm:$0xff]  ;;  %v2071_v46 = vpack.c.bf16 %v332_v39, %v324_v38 }
 0x19f   : > { %v1257_v38 = vld [vmem:[#allocation7 + $0x8d0] sm:$0xff] }
 0x1a0   : > { %2020 = vmatpush1.bf16.msra.mxu1 %v2019_v50  ;;  %v340_v50 = vld [vmem:[#allocation7 + $0x2a0] sm:$0xff] }
 0x1a1   : > { %2054 = vmatprep.subr.bf16.mxu1 %v2053_v51  ;;  %2052 = vmatpush1.bf16.msra.mxu0 %v2051_v54  ;;  %v348_v51 = vld [vmem:[#allocation7 + $0x2e0] sm:$0xff]  ;;  %v2103_v54 = vpack.c.bf16 %v334_v45, %v326_v44 }
 0x1a2   : > { %2086 = vmatprep.subr.bf16.mxu0 %v2085_v58  ;;  %v350_v58 = vld [vmem:[#allocation7 + $0x2f0] sm:$0xff]  ;;  %v2075_v59 = vpack.c.bf16 %v348_v51, %v340_v50  ;;  %v1255_v44 = vld [vmem:[#allocation7 + $0x8c0] sm:$0xff] }
 0x1a3   : > { %937 = vmatmul.mubr.f32.vlgmr.msra.gmra.mrb[0].mxu1 %v2790_v1  ;;  %v2107_v5 = vpack.c.bf16 %v350_v58, %v342_v57  ;;  %v1265_v50 = vld [vmem:[#allocation7 + $0x910] sm:$0xff]  ;;  %v1263_v57 = vld [vmem:[#allocation7 + $0x900] sm:$0xff] }
 0x1a4   : > { %2056 = vmatpush1.bf16.msra.mxu1 %v2055_v61  ;;  %1078 = vmatprep.mubr.f32.mxu1 %v2544_v0  ;;  %v367_v61 = vld [vmem:[#allocation7 + $0x378] sm:$0xff]  ;;  %v1273_v51 = vld [vmem:[#allocation7 + $0x950] sm:$0xff]  ;;  %v1271_v58 = vld [vmem:[#allocation7 + $0x940] sm:$0xff] }
 0x1a5   : > { %2058 = vmatprep.subr.bf16.mxu1 %v2057_v2  ;;  %1008 = vmatmul.mubr.f32.vlgmr.msra.gmra.mrb[2].mxu0 %v2790_v1  ;;  %v333_v1 = vld [vmem:[#allocation7 + $0x268] sm:$0xff]  ;;  %v364_v2 = vld [vmem:[#allocation7 + $0x360] sm:$0xff]  ;;  %v2109_v6 = vpack.c.bf16 %v367_v61, %v359_v60  ;;  %v2127_v3 = vpack.c.bf16 %v1271_v58, %v1263_v57 }
 0x1a6   : > { %2088 = vmatpush1.bf16.msra.mxu0 %v2087_v7  ;;  %1149 = vmatprep.mubr.f32.mxu0 %v2544_v0  ;;  %v2069_v37 = vpack.c.bf16 %v333_v1, %v325_v29  ;;  %v358_v7 = vld [vmem:[#allocation7 + $0x330] sm:$0xff]  ;;  %v2079_v9 = vpack.c.bf16 %v364_v2, %v356_v63  ;;  %v1258_v29 = vld [vmem:[#allocation7 + $0x8d8] sm:$0xff]  ;;  %v1280_v60 = vld [vmem:[#allocation7 + $0x988] sm:$0xff] }
 0x1a7   : > { %2090 = vmatprep.subr.bf16.mxu0 %v2089_v8  ;;  %v366_v8 = vld [vmem:[#allocation7 + $0x370] sm:$0xff]  ;;  %v2153_v36 = vpack.c.bf16 %v1258_v29, %v1250_v28  ;;  %v1288_v61 = vld [vmem:[#allocation7 + $0x9c8] sm:$0xff]  ;;  %v1330_v28 = vld [vmem:[#allocation7 + $0xb18] sm:$0xff] }
 0x1a8   : > { %2060 = vmatpush1.bf16.msra.mxu1 %v2059_v11  ;;  %v383_v11 = vld [vmem:[#allocation7 + $0x3f8] sm:$0xff]  ;;  %v2111_v15 = vpack.c.bf16 %v366_v8, %v358_v7  ;;  %v1281_v63 = vld [vmem:[#allocation7 + $0x990] sm:$0xff]  ;;  %v1279_v7 = vld [vmem:[#allocation7 + $0x980] sm:$0xff] }
 0x1a9   : > { %2062 = vmatprep.subr.bf16.mxu1 %v2061_v14  ;;  %v380_v14 = vld [vmem:[#allocation7 + $0x3e0] sm:$0xff]  ;;  %v2113_v16 = vpack.c.bf16 %v383_v11, %v375_v10  ;;  %v1289_v2 = vld [vmem:[#allocation7 + $0x9d0] sm:$0xff]  ;;  %v1296_v10 = vld [vmem:[#allocation7 + $0xa08] sm:$0xff] }
 0x1aa   : > { %2092 = vmatpush1.bf16.msra.mxu0 %v2091_v19  ;;  %v2083_v19 = vpack.c.bf16 %v380_v14, %v372_v13  ;;  %v1287_v8 = vld [vmem:[#allocation7 + $0x9c0] sm:$0xff]  ;;  %v1304_v11 = vld [vmem:[#allocation7 + $0xa48] sm:$0xff]  ;;  %v1297_v13 = vld [vmem:[#allocation7 + $0xa10] sm:$0xff] }
 0x1ab   : > { %2094 = vmatprep.subr.bf16.mxu0 %v2093_v20  ;;  %v1234_v20 = vld [vmem:[#allocation7 + $0x818] sm:$0xff]  ;;  %v1305_v14 = vld [vmem:[#allocation7 + $0xa50] sm:$0xff]  ;;  %v2133_v18 = vpack.c.bf16 %v1304_v11, %v1296_v10  ;;  %v1236_v58 = vld [vmem:[#allocation7 + $0x828] sm:$0xff] }
 0x1ac   : > { %2064 = vmatpush1.bf16.msra.mxu1 %v2063_v23  ;;  %v1232_v23 = vld [vmem:[#allocation7 + $0x808] sm:$0xff]  ;;  %v2149_v25 = vpack.c.bf16 %v1242_v21, %v1234_v20  ;;  %v1303_v20 = vld [vmem:[#allocation7 + $0xa40] sm:$0xff]  ;;  %v2167_v21 = vpack.c.bf16 %v1305_v14, %v1297_v13  ;;  %v1338_v29 = vld [vmem:[#allocation7 + $0xb58] sm:$0xff] }
 0x1ad   : > { %2066 = vmatprep.subr.bf16.mxu1 %v2065_v26  ;;  %v1233_v26 = vld [vmem:[#allocation7 + $0x810] sm:$0xff]  ;;  %v2117_v1 = vpack.c.bf16 %v1240_v24, %v1232_v23  ;;  %v1320_v23 = vld [vmem:[#allocation7 + $0xac8] sm:$0xff]  ;;  %v1262_v13 = vld [vmem:[#allocation7 + $0x8f8] sm:$0xff] }
 0x1ae   : > { %2096 = vmatpush1.bf16.msra.mxu0 %v2095_v30  ;;  %v1231_v30 = vld [vmem:[#allocation7 + $0x800] sm:$0xff]  ;;  %v2151_v32 = vpack.c.bf16 %v1241_v27, %v1233_v26  ;;  %v1321_v26 = vld [vmem:[#allocation7 + $0xad0] sm:$0xff]  ;;  %v1252_v10 = vld [vmem:[#allocation7 + $0x8a8] sm:$0xff] }
 0x1af   : > { %2098 = vmatprep.subr.bf16.mxu0 %v2097_v31  ;;  %v1239_v31 = vld [vmem:[#allocation7 + $0x840] sm:$0xff]  ;;  %v1260_v11 = vld [vmem:[#allocation7 + $0x8e8] sm:$0xff] }
 0x1b0   : > { %2068 = vmatpush1.bf16.msra.mxu1 %v2067_v34  ;;  %v1256_v34 = vld [vmem:[#allocation7 + $0x8c8] sm:$0xff]  ;;  %v2119_v39 = vpack.c.bf16 %v1239_v31, %v1231_v30  ;;  %v1311_v30 = vld [vmem:[#allocation7 + $0xa80] sm:$0xff] }
 0x1b1   : > { %2070 = vmatprep.subr.bf16.mxu1 %v2069_v37  ;;  %v1249_v37 = vld [vmem:[#allocation7 + $0x890] sm:$0xff]  ;;  %v1319_v31 = vld [vmem:[#allocation7 + $0xac0] sm:$0xff] }
 0x1b2   : > { %2100 = vmatpush1.bf16.msra.mxu0 %v2099_v42  ;;  %v2121_v42 = vpack.c.bf16 %v1256_v34, %v1248_v33  ;;  %v2155_v45 = vpack.c.bf16 %v1257_v38, %v1249_v37  ;;  %v1328_v33 = vld [vmem:[#allocation7 + $0xb08] sm:$0xff]  ;;  %v1329_v37 = vld [vmem:[#allocation7 + $0xb10] sm:$0xff] }
 0x1b3   : > { %2102 = vmatprep.subr.bf16.mxu0 %v2101_v43  ;;  %v1247_v43 = vld [vmem:[#allocation7 + $0x880] sm:$0xff]  ;;  %v1336_v34 = vld [vmem:[#allocation7 + $0xb48] sm:$0xff]  ;;  %v1337_v38 = vld [vmem:[#allocation7 + $0xb50] sm:$0xff] }
 0x1b4   : > { %2072 = vmatpush1.bf16.msra.mxu1 %v2071_v46  ;;  %v1264_v46 = vld [vmem:[#allocation7 + $0x908] sm:$0xff]  ;;  %v2123_v52 = vpack.c.bf16 %v1255_v44, %v1247_v43  ;;  %v2175_v43 = vpack.c.bf16 %v1337_v38, %v1329_v37  ;;  %v1294_v37 = vld [vmem:[#allocation7 + $0x9f8] sm:$0xff] }
 0x1b5   : > { %2074 = vmatprep.subr.bf16.mxu1 %v2073_v49  ;;  %v2157_v49 = vpack.c.bf16 %v1274_v41, %v1266_v40  ;;  %v2141_v40 = vpack.c.bf16 %v1336_v34, %v1328_v33  ;;  %v1327_v41 = vld [vmem:[#allocation7 + $0xb00] sm:$0xff]  ;;  %v1284_v33 = vld [vmem:[#allocation7 + $0x9a8] sm:$0xff] }
 0x1b6   : > { %2104 = vmatpush1.bf16.msra.mxu0 %v2103_v54  ;;  %v1290_v54 = vld [vmem:[#allocation7 + $0x9d8] sm:$0xff]  ;;  %v1292_v34 = vld [vmem:[#allocation7 + $0x9e8] sm:$0xff] }
 0x1b7   : > { %2106 = vmatprep.subr.bf16.mxu0 %v2105_v55  ;;  %v2125_v55 = vpack.c.bf16 %v1272_v47, %v1264_v46  ;;  %v1352_v46 = vld [vmem:[#allocation7 + $0xbc8] sm:$0xff]  ;;  %v1346_v47 = vld [vmem:[#allocation7 + $0xb98] sm:$0xff] }
 0x1b8   : > { %2076 = vmatpush1.bf16.msra.mxu1 %v2075_v59  ;;  %v2159_v59 = vpack.c.bf16 %v1273_v51, %v1265_v50  ;;  %v1343_v50 = vld [vmem:[#allocation7 + $0xb80] sm:$0xff] }
 0x1b9   : > { %2078 = vmatprep.subr.bf16.mxu1 %v2077_v62  ;;  %v2161_v62 = vpack.c.bf16 %v1290_v54, %v1282_v53  ;;  %v1351_v51 = vld [vmem:[#allocation7 + $0xbc0] sm:$0xff]  ;;  %v1345_v54 = vld [vmem:[#allocation7 + $0xb90] sm:$0xff] }
 0x1ba   : > { %2108 = vmatpush1.bf16.msra.mxu0 %v2107_v5  ;;  %v1306_v5 = vld [vmem:[#allocation7 + $0xa58] sm:$0xff]  ;;  %v2147_v53 = vpack.c.bf16 %v1351_v51, %v1343_v50  ;;  %v1299_v51 = vld [vmem:[#allocation7 + $0xa20] sm:$0xff] }
 0x1bb   : > { %2110 = vmatprep.subr.bf16.mxu0 %v2109_v6  ;;  %v2129_v6 = vpack.c.bf16 %v1288_v61, %v1280_v60  ;;  %v1238_v60 = vld [vmem:[#allocation7 + $0x838] sm:$0xff] }
 0x1bc   : > { %2080 = vmatpush1.bf16.msra.mxu1 %v2079_v9  ;;  %v2163_v9 = vpack.c.bf16 %v1289_v2, %v1281_v63 }
 0x1bd   : > { %2082 = vmatprep.subr.bf16.mxu1 %v2081_v12  ;;  %v2165_v12 = vpack.c.bf16 %v1306_v5, %v1298_v4  ;;  %v1243_v4 = vld [vmem:[#allocation7 + $0x860] sm:$0xff] }
 0x1be   : > { %2112 = vmatpush1.bf16.msra.mxu0 %v2111_v15  ;;  %v2131_v15 = vpack.c.bf16 %v1287_v8, %v1279_v7  ;;  %v1237_v8 = vld [vmem:[#allocation7 + $0x830] sm:$0xff] }
 0x1bf   : > { %2114 = vmatprep.subr.bf16.mxu0 %v2113_v16  ;;  %v1314_v16 = vld [vmem:[#allocation7 + $0xa98] sm:$0xff] }
 0x1c0   : > { %2084 = vmatpush1.bf16.msra.mxu1 %v2083_v19  ;;  %v1295_v19 = vld [vmem:[#allocation7 + $0xa00] sm:$0xff]  ;;  %v2169_v24 = vpack.c.bf16 %v1322_v17, %v1314_v16 }
 0x1c1   : > { %1856 = vmatprep.subr.mxu1 %v2544_v0  ;;  %v2135_v27 = vpack.c.bf16 %v1303_v20, %v1295_v19  ;;  %v1251_v17 = vld [vmem:[#allocation7 + $0x8a0] sm:$0xff]  ;;  %v2185_v20 = vpack.c.bf16 %v1260_v11, %v1252_v10  ;;  %v1334_v10 = vld [vmem:[#allocation7 + $0xb38] sm:$0xff] }
 0x1c2   : > { %2116 = vmatpush1.bf16.msra.mxu0 %v2115_v22  ;;  %v1312_v22 = vld [vmem:[#allocation7 + $0xa88] sm:$0xff]  ;;  %v1342_v11 = vld [vmem:[#allocation7 + $0xb78] sm:$0xff] }
 0x1c3   : > { %1079 = vmatmul.mubr.f32.vlgmr.msra.gmra.mrb[2].mxu1 %v2812_v35  ;;  %2150 = vmatprep.subr.bf16.mxu0 %v2149_v25  ;;  %v1313_v25 = vld [vmem:[#allocation7 + $0xa90] sm:$0xff] }
 0x1c4   : > { %1857 = vmatpush3.msra.mxu1 %v2796_v56  ;;  %1858 = vmatprep.mubr.msk.f32.mxu1 %vm2545_vm0, %v2544_v0 }
 0x1c5   : > { %2118 = vmatprep.subr.bf16.mxu1 %v2117_v1  ;;  %1150 = vmatmul.mubr.f32.vlgmr.msra.gmra.mrb[4].mxu0 %v2812_v35  ;;  %v2137_v1 = vpack.c.bf16 %v1320_v23, %v1312_v22  ;;  %v1253_v22 = vld [vmem:[#allocation7 + $0x8b0] sm:$0xff] }
 0x1c6   : > { %2152 = vmatpush1.bf16.msra.mxu0 %v2151_v32  ;;  %1494 = vmatprep.mubr.f32.mxu0 %v2544_v0  ;;  %v2171_v32 = vpack.c.bf16 %v1321_v26, %v1313_v25  ;;  %v1261_v23 = vld [vmem:[#allocation7 + $0x8f0] sm:$0xff]  ;;  %v1270_v25 = vld [vmem:[#allocation7 + $0x938] sm:$0xff] }
 0x1c7   : > { %1859 = vmatmul.mubr.msk.f32.vlgmr.msra.gmra.mrb[4].mxu1 %vm384_vm1, %v2343_v48  ;;  %2154 = vmatprep.subr.bf16.mxu0 %v2153_v36  ;;  %v2173_v36 = vpack.c.bf16 %v1338_v29, %v1330_v28  ;;  %v1278_v26 = vld [vmem:[#allocation7 + $0x978] sm:$0xff]  ;;  %v2219_v28 = vpack.c.bf16 %v1261_v23, %v1253_v22  ;;  %v1267_v29 = vld [vmem:[#allocation7 + $0x920] sm:$0xff]  ;;  %v1356_v22 = vld [vmem:[#allocation7 + $0xbe8] sm:$0xff] }
 0x1c8   : > { %2120 = vmatpush1.bf16.msra.mxu1 %v2119_v39  ;;  %1423 = vmatprep.mubr.f32.mxu1 %v2544_v0  ;;  %v2139_v39 = vpack.c.bf16 %v1319_v31, %v1311_v30  ;;  %v2221_v30 = vpack.c.bf16 %v1278_v26, %v1270_v25  ;;  %v1269_v31 = vld [vmem:[#allocation7 + $0x930] sm:$0xff]  ;;  %v1350_v23 = vld [vmem:[#allocation7 + $0xbb8] sm:$0xff]  ;;  %v1347_v26 = vld [vmem:[#allocation7 + $0xba0] sm:$0xff] }
 0x1c9   : > { %2122 = vmatprep.subr.bf16.mxu1 %v2121_v42  ;;  %v1335_v42 = vld [vmem:[#allocation7 + $0xb40] sm:$0xff] }
 0x1ca   : > { %2156 = vmatpush1.bf16.msra.mxu0 %v2155_v45  ;;  %v2143_v44 = vpack.c.bf16 %v1335_v42, %v1327_v41  ;;  %v1344_v45 = vld [vmem:[#allocation7 + $0xb88] sm:$0xff]  ;;  %v1291_v41 = vld [vmem:[#allocation7 + $0x9e0] sm:$0xff]  ;;  %v2193_v42 = vpack.c.bf16 %v1292_v34, %v1284_v33 }
 0x1cb   : > { %2158 = vmatprep.subr.bf16.mxu0 %v2157_v49  ;;  %v2145_v48 = vpack.c.bf16 %v1352_v46, %v1344_v45  ;;  %v1354_v49 = vld [vmem:[#allocation7 + $0xbd8] sm:$0xff]  ;;  %v1293_v45 = vld [vmem:[#allocation7 + $0x9f0] sm:$0xff]  ;;  %v1300_v46 = vld [vmem:[#allocation7 + $0xa28] sm:$0xff] }
 0x1cc   : > { %2124 = vmatpush1.bf16.msra.mxu1 %v2123_v52  ;;  %v2177_v52 = vpack.c.bf16 %v1354_v49, %v1346_v47  ;;  %v1308_v47 = vld [vmem:[#allocation7 + $0xa68] sm:$0xff]  ;;  %v1310_v49 = vld [vmem:[#allocation7 + $0xa78] sm:$0xff] }
 0x1cd   : > { %2126 = vmatprep.subr.bf16.mxu1 %v2125_v55  ;;  %v1353_v55 = vld [vmem:[#allocation7 + $0xbd0] sm:$0xff] }
 0x1ce   : > { %2160 = vmatpush1.bf16.msra.mxu0 %v2159_v59  ;;  %v2179_v57 = vpack.c.bf16 %v1353_v55, %v1345_v54  ;;  %v1244_v59 = vld [vmem:[#allocation7 + $0x868] sm:$0xff]  ;;  %v1301_v55 = vld [vmem:[#allocation7 + $0xa30] sm:$0xff] }
 0x1cf   : > { %2162 = vmatprep.subr.bf16.mxu0 %v2161_v62  ;;  %v2181_v61 = vpack.c.bf16 %v1244_v59, %v1236_v58  ;;  %v1246_v62 = vld [vmem:[#allocation7 + $0x878] sm:$0xff]  ;;  %v1316_v58 = vld [vmem:[#allocation7 + $0xaa8] sm:$0xff] }
 0x1d0   : > { %2128 = vmatpush1.bf16.msra.mxu1 %v2127_v3  ;;  %v2213_v63 = vpack.c.bf16 %v1246_v62, %v1238_v60  ;;  %v1235_v3 = vld [vmem:[#allocation7 + $0x820] sm:$0xff]  ;;  %v1324_v59 = vld [vmem:[#allocation7 + $0xae8] sm:$0xff]  ;;  %v1318_v60 = vld [vmem:[#allocation7 + $0xab8] sm:$0xff] }
 0x1d1   : > { %2130 = vmatprep.subr.bf16.mxu1 %v2129_v6  ;;  %v1227_v6 = vmul.f32 2.0, %v2796_v56  ;;  %v1268_v56 = vld [vmem:[#allocation7 + $0x928] sm:$0xff] }
 0x1d2   : > { %2164 = vmatpush1.bf16.msra.mxu0 %v2163_v9  ;;  %v1245_v9 = vld [vmem:[#allocation7 + $0x870] sm:$0xff] }
 0x1d3   : > { %2166 = vmatprep.subr.bf16.mxu0 %v2165_v12  ;;  %v1254_v12 = vld [vmem:[#allocation7 + $0x8b8] sm:$0xff]  ;;  %v2215_v16 = vpack.c.bf16 %v1245_v9, %v1237_v8  ;;  %v1332_v8 = vld [vmem:[#allocation7 + $0xb28] sm:$0xff] }
 0x1d4   : > { %2132 = vmatpush1.bf16.msra.mxu1 %v2131_v15  ;;  %v2183_v15 = vpack.c.bf16 %v1243_v4, %v1235_v3  ;;  %v1323_v3 = vld [vmem:[#allocation7 + $0xae0] sm:$0xff]  ;;  %v2201_v4 = vpack.c.bf16 %v1324_v59, %v1316_v58  ;;  %v1340_v9 = vld [vmem:[#allocation7 + $0xb68] sm:$0xff] }
 0x1d5   : > { %2134 = vmatprep.subr.bf16.mxu1 %v2133_v18  ;;  %v1259_v18 = vld [vmem:[#allocation7 + $0x8e0] sm:$0xff] }
 0x1d6   : > { %2168 = vmatpush1.bf16.msra.mxu0 %v2167_v21  ;;  %v2217_v21 = vpack.c.bf16 %v1262_v13, %v1254_v12 }
 0x1d7   : > { %2170 = vmatprep.subr.bf16.mxu0 %v2169_v24  ;;  %v1276_v24 = vld [vmem:[#allocation7 + $0x968] sm:$0xff] }
 0x1d8   : > { %2136 = vmatpush1.bf16.msra.mxu1 %v2135_v27  ;;  %v2187_v27 = vpack.c.bf16 %v1259_v18, %v1251_v17  ;;  %v2237_v17 = vpack.c.bf16 %v1342_v11, %v1334_v10  ;;  %v1333_v18 = vld [vmem:[#allocation7 + $0xb30] sm:$0xff] }
 0x1d9   : > { %2138 = vmatprep.subr.bf16.mxu1 %v2137_v1  ;;  %v1275_v1 = vld [vmem:[#allocation7 + $0x960] sm:$0xff] }
 0x1da   : > { %2172 = vmatpush1.bf16.msra.mxu0 %v2171_v32  ;;  %v1277_v32 = vld [vmem:[#allocation7 + $0x970] sm:$0xff]  ;;  %v2191_v38 = vpack.c.bf16 %v1275_v1, %v1267_v29  ;;  %v1355_v29 = vld [vmem:[#allocation7 + $0xbe0] sm:$0xff] }
 0x1db   : > { %2174 = vmatprep.subr.bf16.mxu0 %v2173_v36  ;;  %v1286_v36 = vld [vmem:[#allocation7 + $0x9b8] sm:$0xff]  ;;  %v1349_v1 = vld [vmem:[#allocation7 + $0xbb0] sm:$0xff] }
 0x1dc   : > { %2140 = vmatpush1.bf16.msra.mxu1 %v2139_v39  ;;  %v2223_v39 = vpack.c.bf16 %v1277_v32, %v1269_v31  ;;  %v1653_v32 = vlaneseq }
 0x1dd   : > { %2142 = vmatprep.subr.bf16.mxu1 %v2141_v40  ;;  %v1283_v40 = vld [vmem:[#allocation7 + $0x9a0] sm:$0xff] }
 0x1de   : > { %2176 = vmatpush1.bf16.msra.mxu0 %v2175_v43  ;;  %v2225_v43 = vpack.c.bf16 %v1294_v37, %v1286_v36  ;;  %v2195_v50 = vpack.c.bf16 %v1291_v41, %v1283_v40  ;;  %v1654_v33 = vshrl.u32 %v1653_v32, 7  ;;  %v1651_v37 = vld [vmem:[#allocation8] sm:$0xff] }
 0x1df   : > { %2178 = vmatprep.subr.bf16.mxu0 %v2177_v52  ;;  %v1307_v52 = vld [vmem:[#allocation7 + $0xa60] sm:$0xff] }
 0x1e0   : > { %2144 = vmatpush1.bf16.msra.mxu1 %v2143_v44  ;;  %v1285_v44 = vld [vmem:[#allocation7 + $0x9b0] sm:$0xff]  ;;  %v2199_v62 = vpack.c.bf16 %v1307_v52, %v1299_v51  ;;  %v1655_v34 = vsub.s32 0, %v1654_v33  ;;  %v1663_v36 = vsub.s32 2, %v1654_v33  ;;  %v1679_v51 = vsub.s32 6, %v1654_v33 }
 0x1e1   : > { %2146 = vmatprep.subr.bf16.mxu1 %v2145_v48  ;;  %v1302_v48 = vld [vmem:[#allocation7 + $0xa38] sm:$0xff]  ;;  %v1675_v52 = vsub.s32 5, %v1654_v33 }
 0x1e2   : > { %2180 = vmatpush1.bf16.msra.mxu0 %v2179_v57  ;;  %v2229_v54 = vpack.c.bf16 %v1310_v49, %v1302_v48  ;;  %v1309_v57 = vld [vmem:[#allocation7 + $0xa70] sm:$0xff]  ;;  %v1656_v40 = vrot.slane %v1651_v37, %v1655_v34  ;;  %v1664_v41 = vrot.slane %v1651_v37, %v1663_v36 }
 0x1e3   : > { %2214 = vmatprep.subr.bf16.mxu0 %v2213_v63  ;;  %v2231_v63 = vpack.c.bf16 %v1309_v57, %v1301_v55  ;;  %v1680_v55 = vrot.slane %v1651_v37, %v1679_v51  ;;  %v1676_v57 = vrot.slane %v1651_v37, %v1675_v52 }
 0x1e4   : > { %2148 = vmatpush1.bf16.msra.mxu1 %v2147_v53  ;;  %v2197_v53 = vpack.c.bf16 %v1308_v47, %v1300_v46 }
 0x1e5   : > { %2182 = vmatprep.subr.bf16.mxu1 %v2181_v61  ;;  %v1326_v61 = vld [vmem:[#allocation7 + $0xaf8] sm:$0xff] }
 0x29a   : > { %v1222_v2 = vpop.f32.mrb[4].mxu1 }
 0x29b   : > { %v1226_v5 = vmul.f32 2.0, %v1222_v2  ;;  %v1860_v7 = vpop.f32.mrb[5].mxu1  ;;  %v1315_v2 = vld [vmem:[#allocation7 + $0xaa0] sm:$0xff] }
 0x29c   : > { %v1325_v7 = vld [vmem:[#allocation7 + $0xaf0] sm:$0xff]  ;;  %v2203_v12 = vpack.c.bf16 %v1323_v3, %v1315_v2 }
 0x29d   : > { %v1228_v14 = vsub.f32 %v1226_v5, %v1227_v6  ;;  %v2233_v5 = vpack.c.bf16 %v1326_v61, %v1318_v60  ;;  %v1317_v6 = vld [vmem:[#allocation7 + $0xab0] sm:$0xff] }
 0x29e   : > { %v2235_v13 = vpack.c.bf16 %v1325_v7, %v1317_v6 }
 0x29f   : > { %v2824_v19 = vsub.f32 %v1228_v14, %v2812_v35  ;;  %v2189_v35 = vpack.c.bf16 %v1276_v24, %v1268_v56  ;;  %v1331_v14 = vld [vmem:[#allocation7 + $0xb20] sm:$0xff]  ;;  %v1358_v56 = vld [vmem:[#allocation7 + $0xbf8] sm:$0xff] }
 0x2a1   : > { %1424 = vmatmul.mubr.f32.vlgmr.msra.gmra.mrb[0].mxu1 %v2824_v19  ;;  %1495 = vmatmul.mubr.f32.vlgmr.msra.gmra.mrb[2].mxu0 %v2824_v19 }
 0x2a2   : > { %2184 = vmatpush1.bf16.msra.mxu1 %v2183_v15  ;;  %2216 = vmatpush1.bf16.msra.mxu0 %v2215_v16  ;;  %v1339_v15 = vld [vmem:[#allocation7 + $0xb60] sm:$0xff]  ;;  %v2205_v16 = vpack.c.bf16 %v1340_v9, %v1332_v8 }
 0x2a3   : > { %2186 = vmatprep.subr.bf16.mxu1 %v2185_v20  ;;  %2218 = vmatprep.subr.bf16.mxu0 %v2217_v21  ;;  %v1341_v20 = vld [vmem:[#allocation7 + $0xb70] sm:$0xff]  ;;  %v1348_v21 = vld [vmem:[#allocation7 + $0xba8] sm:$0xff]  ;;  %v2207_v24 = vpack.c.bf16 %v1339_v15, %v1331_v14 }
 0x2a4   : > { %1565 = vmatprep.mubr.f32.mxu1 %v2544_v0  ;;  %1636 = vmatprep.mubr.f32.mxu0 %v2544_v0  ;;  %v2227_v0 = vpack.c.bf16 %v1293_v45, %v1285_v44  ;;  %v2239_v25 = vpack.c.bf16 %v1341_v20, %v1333_v18 }
 0x2a6   : > { %2188 = vmatpush1.bf16.msra.mxu1 %v2187_v27  ;;  %2220 = vmatpush1.bf16.msra.mxu0 %v2219_v28  ;;  %v2209_v27 = vpack.c.bf16 %v1356_v22, %v1348_v21  ;;  %v2241_v28 = vpack.c.bf16 %v1358_v56, %v1350_v23 }
 0x2a7   : > { %2190 = vmatprep.subr.bf16.mxu1 %v2189_v35  ;;  %2222 = vmatprep.subr.bf16.mxu0 %v2221_v30  ;;  %v1357_v35 = vld [vmem:[#allocation7 + $0xbf0] sm:$0xff]  ;;  %v2211_v30 = vpack.c.bf16 %v1355_v29, %v1347_v26 }
 0x2a8   : > { %v2243_v31 = vpack.c.bf16 %v1357_v35, %v1349_v1 }
 0x2aa   : > { %2192 = vmatpush1.bf16.msra.mxu1 %v2191_v38  ;;  %2224 = vmatpush1.bf16.msra.mxu0 %v2223_v39  ;;  %v1659_v38 = vsub.s32 1, %v1654_v33  ;;  %v1667_v39 = vsub.s32 3, %v1654_v33 }
 0x2ab   : > { %2194 = vmatprep.subr.bf16.mxu1 %v2193_v42  ;;  %2226 = vmatprep.subr.bf16.mxu0 %v2225_v43 }
 0x2ac   : > { %v1660_v42 = vrot.slane %v1651_v37, %v1659_v38  ;;  %v1668_v43 = vrot.slane %v1651_v37, %v1667_v39 }
 0x2ae   : > { %2196 = vmatpush1.bf16.msra.mxu1 %v2195_v50  ;;  %2228 = vmatpush1.bf16.msra.mxu0 %v2227_v0  ;;  %v1671_v0 = vsub.s32 4, %v1654_v33 }
 0x2af   : > { %2198 = vmatprep.subr.bf16.mxu1 %v2197_v53  ;;  %2230 = vmatprep.subr.bf16.mxu0 %v2229_v54  ;;  %v1683_v53 = vsub.s32 7, %v1654_v33 }
 0x2b0   : > { %v1672_v54 = vrot.slane %v1651_v37, %v1671_v0 }
 0x2b1   : > { %v1684_v58 = vrot.slane %v1651_v37, %v1683_v53 }
 0x2b2   : > { %2200 = vmatpush1.bf16.msra.mxu1 %v2199_v62  ;;  %2232 = vmatpush1.bf16.msra.mxu0 %v2231_v63 }
 0x2b3   : > { %2202 = vmatprep.subr.bf16.mxu1 %v2201_v4  ;;  %2234 = vmatprep.subr.bf16.mxu0 %v2233_v5 }
 0x2b6   : > { %2204 = vmatpush1.bf16.msra.mxu1 %v2203_v12  ;;  %2236 = vmatpush1.bf16.msra.mxu0 %v2235_v13 }
 0x2b7   : > { %2206 = vmatprep.subr.bf16.mxu1 %v2205_v16  ;;  %2238 = vmatprep.subr.bf16.mxu0 %v2237_v17 }
 0x2ba   : > { %2208 = vmatpush1.bf16.msra.mxu1 %v2207_v24  ;;  %2240 = vmatpush1.bf16.msra.mxu0 %v2239_v25 }
 0x2bb   : > { %2210 = vmatprep.subr.bf16.mxu1 %v2209_v27  ;;  %2242 = vmatprep.subr.bf16.mxu0 %v2241_v28 }
 0x2be   : > { %2212 = vmatpush1.bf16.msra.mxu1 %v2211_v30  ;;  %2244 = vmatpush1.bf16.msra.mxu0 %v2243_v31 }
 0x2c1   : > { %1566 = vmatmul.mubr.f32.vlgmr.msra.gmra.mrb[2].mxu1 %v2824_v19  ;;  %1637 = vmatmul.mubr.f32.vlgmr.msra.gmra.mrb[4].mxu0 %v2824_v19 }
 0x374   : > { %v1425_v44 = vpop.f32.mrb[0].mxu1  ;;  %v1496_v45 = vpop.f32.mrb[2].mxu0 }
 0x375   : > { %v1693_v46 = vadd.f32 %v1656_v40, %v1425_v44  ;;  %v1695_v47 = vadd.f32 %v1664_v41, %v1496_v45  ;;  %v1427_v48 = vpop.f32.mrb[1].mxu1  ;;  %v1498_v49 = vpop.f32.mrb[3].mxu0 }
 0x376   : > { %v1694_v19 = vadd.f32 %v1660_v42, %v1427_v48  ;;  %v1696_v50 = vadd.f32 %v1668_v43, %v1498_v49 }
 0x377   : > { %1701 = vst [vmem:[%s252_s23] sm:$0xff] %v1693_v46  ;;  %1703 = vst [vmem:[%s252_s23 + $0x10] sm:$0xff] %v1695_v47 }
 0x378   : > { %1702 = vst [vmem:[%s252_s23 + $0x8] sm:$0xff] %v1694_v19  ;;  %1704 = vst [vmem:[%s252_s23 + $0x18] sm:$0xff] %v1696_v50 }
 0x394   : > { %v1567_v59 = vpop.f32.mrb[2].mxu1  ;;  %v1638_v60 = vpop.f32.mrb[4].mxu0 }
 0x395   : > { %v1697_v61 = vadd.f32 %v1672_v54, %v1567_v59  ;;  %v1699_v62 = vadd.f32 %v1680_v55, %v1638_v60  ;;  %v1569_v63 = vpop.f32.mrb[3].mxu1  ;;  %v1640_v2 = vpop.f32.mrb[5].mxu0 }
 0x396   : > { %v1698_v3 = vadd.f32 %v1676_v57, %v1569_v63  ;;  %v1700_v4 = vadd.f32 %v1684_v58, %v1640_v2 }
 0x397   : > { %1705 = vst [vmem:[%s252_s23 + $0x20] sm:$0xff] %v1697_v61  ;;  %1707 = vst [vmem:[%s252_s23 + $0x30] sm:$0xff] %v1699_v62 }
 0x398   : > { %1706 = vst [vmem:[%s252_s23 + $0x28] sm:$0xff] %v1698_v3  ;;  %1708 = vst [vmem:[%s252_s23 + $0x38] sm:$0xff] %v1700_v4 }
 0x399   : > { %2471 = shalt.err (!%p2468_p9)
}
 0x39a   : > { %s2472_s24 = scalar_lea.hbm %s2837_s13, 1024  ;;  %s2476_s6 = scalar_lea.hbm %s2885_s4, 2048 }
 0x39b   : > { %p2473_p8 = scmp.ne.s32.totalorder %s2837_s13, %s2472_s24  ;;  %p2477_p6 = scmp.lt.u32.totalorder %s2837_s13, %s2885_s4 }
 0x39c   : > { %p2478_p10 = scmp.lt.u32.totalorder %s2476_s6, %s2472_s24  ;;  %p2480_p7 = scmp.lt.u32.totalorder %s2472_s24, %s2837_s13 }
 0x39d   : > { %p2474_p11 = pnand %p2473_p8, %p2717_p5 }
 0x39e   : > { %p2479_p3 = por %p2478_p10, %p2477_p6 }
 0x39f   : > { %p2475_p13 = pneg %p2474_p11 }
 0x3a0   : > { %p2481_p12 = por %p2480_p7, %p2479_p3 }
 0x3a2   : > { %p2482_p2 = pnand %p2481_p12, %p2475_p13 }
 0x3a4   : > { %2485 = shalt.err (!%p2482_p2)
}
 0x3a5   : > { %2275 = dma.vmem_to_hbm [thread:$0]  (%p2717_p5), %s2839_s5, 1024, %s2837_s13, %s1710_s19  }
 0x3a6 PF: > { %s1736_s21 = sand.u32 1, %s2524_s15   ;;  %p2905_p1 = scmp.ne.s32.totalorder %s2890_s22, 0 }
 0x3a7   : > { %p2906_p4 = scmp.ge.s32.totalorder %s2536_s18, 2  ;;  %s1737_s23 = scalar_lea.sflag [#allocation4], %s1736_s21 }
 0x3a9   : > { %p2292_p0 = pnand %p2906_p4, %p2905_p1 }
 0x3ab   : > { %2519 = dma.done.wait (!%p2292_p0), %s1737_s23, 1024  }
 0x3ac   : > { %2521 = vsyncadd (!%p2292_p0), %s1737_s23, 4294966272  ;;  %p19_p9 = scmp.ge.s32.totalorder %s2703_s10, 4   ;;  %s2907_s15 = smov %s2528_s16 }
 0x3ad   : > { %s2908_s16 = smov %s2532_s17  ;;  %s2909_s17 = smov %s2713_s11 }
 0x3ae   : > { %s2910_s18 = smov %s2703_s10  ;;  %21 = sbr.rel (!%p19_p9) target bundleno = 7 (0x7), region = 96 }
 0x3b5   :  { %1742 = vsyncpa [#allocation3], 1 }
 0x3b6   :  { %1744 = vsyncpa [#allocation3 + $0x1], 1 }
 0x3b7   :  { %1745 = vsyncpa [#allocation6], 1 }
 0x3b8   :  { %1747 = vsyncpa [#allocation6 + $0x1], 1 }
 0x3b9   :  { %1748 = vsyncpa [#allocation9], 1 }
 0x3ba   :  { %1749 = vsyncpa [#allocation4], 1 }
 0x3bb   :  { %1751 = vsyncpa [#allocation4 + $0x1], 1 }

</bundles_post_ra>
